<compile_context>
chip_gen: v5e
topology: v5e:2x2
jax: 0.10.0
libtpu: 0.0.40
codegen_flags: <defaults>
</compile_context>

<pallas_src>
import math

import jax
import jax.numpy as jnp
import numpy as np
from jax.experimental import pallas as pl
from jax.experimental.pallas import tpu as pltpu


def _round_up(x, m):
    return (x + m - 1) // m * m


def _cdiv(a, b):
    return -(-a // b)


# ---------------------------------------------------------------------------
# Kernel: one grid step = `tile_p` packed rows (= tile_p * PACK original rows).
# Everything is 2-D and lane-dense; all reductions are matmuls against pinned
# block-diagonal one-hot constants, so no tiny-minor-dim reshapes are needed.
# ---------------------------------------------------------------------------
def causal_self_attention_kernel(x_ref, w_ref, b_ref, sg_ref, mask_ref,
                                 gs_ref, gst_ref, sgt_ref, wout_ref, bout_ref,
                                 o_ref):
    x = x_ref[...]                                              # (tile, pack*C)

    # Single fused projection+expansion: (tile, pack*C) @ (pack*C, 3*pack*CL).
    qkv = jnp.dot(x, w_ref[...], preferred_element_type=jnp.float32)
    qkv = qkv + b_ref[...]
    W = qkv.shape[1] // 3                                       # pack * n_head * C
    q_rep = qkv[:, :W]            # scale NOT here (folded into sg)
    k_rep = qkv[:, W:2 * W]
    v_rep = qkv[:, 2 * W:]

    # All n_head^2 (query head, key head) scores per packed sub-row at once,
    # scale already folded into sg; additive causal mask is a pinned constant.
    scores = jnp.dot(q_rep * k_rep, sg_ref[...],
                     preferred_element_type=jnp.float32) + mask_ref[...]

    # Softmax over key heads.  A shared per-(packed)-row max is shift-exact for
    # every per-group softmax and avoids per-group XLU reduces.
    row_max = jnp.max(scores, axis=-1, keepdims=True)
    p = jnp.exp(scores - row_max)                               # masked lanes -> 0
    denom = jnp.dot(p, gs_ref[...], preferred_element_type=jnp.float32)
    inv = pl.reciprocal(denom, approx=True)                     # EUP slot
    p = p * jnp.dot(inv, gst_ref[...], preferred_element_type=jnp.float32)

    # Value combine + output projection in one matmul (ag folded into W_proj^T).
    p_rep = jnp.dot(p, sgt_ref[...], preferred_element_type=jnp.float32)
    y = jnp.dot(p_rep * v_rep, wout_ref[...],
                preferred_element_type=jnp.float32) + bout_ref[...]
    # TODO(synk): attn/resid dropout omitted — eval semantics (p = 0.0).
    o_ref[...] = y.astype(o_ref.dtype)


# ---------------------------------------------------------------------------
# One-time weight / constant preparation (plain JAX, outside the kernel).
# ---------------------------------------------------------------------------
def _prep_constants(w_qkv, b_qkv, w_proj, b_proj, n_head, pack):
    three_c, C = w_qkv.shape
    assert three_c == 3 * C
    hd = C // n_head
    CL = n_head * C                       # expanded ("replicated") width per row
    P2 = n_head * n_head                  # (query head, key head) score pairs
    scale = 1.0 / math.sqrt(hd)

    # One-hot layout matrices (exact, built once in numpy).
    #   expanded lane j = m*C + nq*hd + d  (key head m, query head nq, dim d)
    #   score column  p = nq*n_head + m
    ek = np.zeros((C, CL), np.float32)        # k/v head-m block broadcast over nq
    sg = np.zeros((CL, P2), np.float32)       # segment-sum over d  -> scores
    ag = np.zeros((CL, C), np.float32)        # segment-sum over m  -> attn output
    gs = np.zeros((P2, n_head), np.float32)   # sum over m          -> softmax denom
    mask = np.zeros((P2,), np.float32)        # additive causal mask over head idx
    for m in range(n_head):
        for nq in range(n_head):
            p = nq * n_head + m
            gs[p, nq] = 1.0
            if m > nq:
                mask[p] = -1e30
            for d in range(hd):
                j = m * C + nq * hd + d
                ek[m * hd + d, j] = 1.0
                sg[j, p] = 1.0
                ag[j, nq * hd + d] = 1.0
    ek = jnp.asarray(ek)

    # Split the per-head-interleaved [h: q|k|v] nn.Linear weight into Q/K/V,
    # with out-columns ordered (head, dim).
    w_r = w_qkv.reshape(n_head, 3, hd, C)
    b_r = b_qkv.reshape(n_head, 3, hd)
    WqT = w_r[:, 0].reshape(C, C).T           # (C_in, C_out = nq*hd + d)
    WkT = w_r[:, 1].reshape(C, C).T
    WvT = w_r[:, 2].reshape(C, C).T
    bq, bk, bv = (b_r[:, t].reshape(C) for t in range(3))

    # Fold replication / ek expansion into the per-row fused weight sections.
    Wq_rep = jnp.tile(WqT, (1, n_head))                       # (C, CL)
    Wk_rep = WkT @ ek                                         # (C, CL)
    Wv_rep = WvT @ ek                                         # (C, CL)
    bq_rep = jnp.tile(bq, n_head)                             # (CL,)
    bk_rep = bk @ ek
    bv_rep = bv @ ek
    w_fold = jnp.asarray(ag) @ w_proj.T                       # (CL, C)  ag folded into proj

    # Block-diagonal (kron with eye(pack)) versions so `pack` original rows are
    # processed independently inside one 128-lane packed row.
    eye_p = jnp.eye(pack, dtype=jnp.float32)
    bd = lambda w: jnp.kron(eye_p, jnp.asarray(w))
    rep_row = lambda v: jnp.tile(jnp.asarray(v).reshape(-1), pack).reshape(1, -1)

    w_big = jnp.concatenate([bd(Wq_rep), bd(Wk_rep), bd(Wv_rep)], axis=1)
    b_big = jnp.concatenate([jnp.tile(bq_rep, pack), jnp.tile(bk_rep, pack),
                             jnp.tile(bv_rep, pack)]).reshape(1, -1)
    sg_bd = bd(sg * scale)            # 1/sqrt(hd) folded into the score reduce
    sgt_bd = bd(sg.T)
    gs_bd = bd(gs)
    gst_bd = bd(gs.T)
    mask_bd = rep_row(mask)
    wout_bd = bd(w_fold)
    bout_bd = rep_row(b_proj)

    return (w_big, b_big, sg_bd, mask_bd, gs_bd, gst_bd, sgt_bd, wout_bd,
            bout_bd)


def causal_self_attention(x, w_qkv, b_qkv, w_proj, b_proj, n_head, *,
                          tile_rows=2048):
    """x: (B, T, C); weights in PyTorch nn.Linear (out, in) convention."""
    B, T, C = x.shape
    rows = B * T

    # Pack PACK rows per 128 lanes when C divides 128 (lane-dense I/O).
    pack = 128 // C if (C <= 128 and 128 % C == 0) else 1

    consts = _prep_constants(w_qkv, b_qkv, w_proj, b_proj, n_head, pack)

    # ---- tile selection over packed rows -----------------------------------
    packed_rows = _cdiv(rows, pack)
    tile_p = max(8, _round_up(max(1, tile_rows // pack), 8))
    tile_p = min(tile_p, _round_up(packed_rows, 8))
    n_steps = _cdiv(packed_rows, tile_p)
    if n_steps == 1 and packed_rows > 8:
        # v7x megacore: make sure the parallel grid has >= 2 steps when there is
        # enough work; costs nothing on v5e/v6e.
        tile_p = _round_up(_cdiv(packed_rows, 2), 8)
        n_steps = _cdiv(packed_rows, tile_p)
    packed_rows_pad = n_steps * tile_p
    rows_pad = packed_rows_pad * pack

    # ---- pack the input rows (free row-major reshape) ----------------------
    x2d = x.reshape(rows, C)
    if rows_pad != rows:
        x2d = jnp.pad(x2d, ((0, rows_pad - rows), (0, 0)))
    xp = x2d.reshape(packed_rows_pad, pack * C)

    row_spec = pl.BlockSpec((tile_p, pack * C), lambda i: (i, 0))
    pinned_specs = [pl.BlockSpec(c.shape, lambda i: (0, 0)) for c in consts]

    outp = pl.pallas_call(
        causal_self_attention_kernel,
        out_shape=jax.ShapeDtypeStruct((packed_rows_pad, pack * C),
                                       jnp.float32),
        grid=(n_steps,),
        in_specs=[row_spec] + pinned_specs,
        out_specs=row_spec,
        compiler_params=pltpu.CompilerParams(
            dimension_semantics=("parallel",),
            vmem_limit_bytes=32 * 1024 * 1024),   # raise v5e default; default on v6e/v7x
    )(xp, *consts)

    return outp.reshape(rows_pad, C)[:rows].reshape(B, T, C)


# ---------------------------------------------------------------------------
# Pure-JAX re-statement of the PyTorch forward (eval mode) for verification.
# ---------------------------------------------------------------------------
def reference(x, w_qkv, b_qkv, w_proj, b_proj, n_head):
    B, T, C = x.shape
    hd = C // n_head
    qkv = jnp.einsum('btc,oc->bto', x, w_qkv) + b_qkv
    qkv = qkv.reshape(B, T, n_head, 3 * hd)
    q, k, v = qkv[..., :hd], qkv[..., hd:2 * hd], qkv[..., 2 * hd:]
    scores = jnp.einsum('btnd,btmd->btnm', q, k) / math.sqrt(hd)
    mask = jnp.tril(jnp.ones((n_head, n_head), dtype=bool))
    scores = jnp.where(mask, scores, -jnp.inf)
    p = jax.nn.softmax(scores, axis=-1)
    attn = jnp.einsum('btnm,btmd->btnd', p, v)
    y = attn.reshape(B, T, C)
    return jnp.einsum('btc,oc->bto', y, w_proj) + b_proj


if __name__ == "__main__":
    # cfg = dict(embed_dim=32, n_head=4, block_size=16, dropout=0.0, bias=True)
    B, T, C, n_head = 2, 8, 32, 4

    key = jax.random.PRNGKey(0)
    kx, kw1, kb1, kw2, kb2 = jax.random.split(key, 5)
    x = jax.random.normal(kx, (B, T, C), dtype=jnp.float32)
    w_qkv = jax.random.normal(kw1, (3 * C, C), dtype=jnp.float32) * 0.05
    b_qkv = jax.random.normal(kb1, (3 * C,), dtype=jnp.float32) * 0.05
    w_proj = jax.random.normal(kw2, (C, C), dtype=jnp.float32) * 0.05
    b_proj = jax.random.normal(kb2, (C,), dtype=jnp.float32) * 0.05

    out = causal_self_attention(x, w_qkv, b_qkv, w_proj, b_proj, n_head)
    out = jax.block_until_ready(out)

    ref = reference(x, w_qkv, b_qkv, w_proj, b_proj, n_head)
    assert out.shape == (B, T, C) and out.dtype == jnp.float32
    # Tolerance 2e-3 accounts for the EUP approximate reciprocal used in the
    # softmax normalization (pl.reciprocal(approx=True)).
    np.testing.assert_allclose(np.asarray(out), np.asarray(ref),
                               rtol=2e-3, atol=2e-3)
    print("KERNEL_OK")
</pallas_src>

<mosaic_0001>
module attributes {stable_mosaic.version = 11 : i64} {
  func.func @causal_self_attention_kernel(%arg0: i32, %arg1: memref<8x128xf32, #tpu.memory_space<vmem>>, %arg2: memref<128x1536xf32, #tpu.memory_space<vmem>>, %arg3: memref<1x1536xf32, #tpu.memory_space<vmem>>, %arg4: memref<512x64xf32, #tpu.memory_space<vmem>>, %arg5: memref<1x64xf32, #tpu.memory_space<vmem>>, %arg6: memref<64x16xf32, #tpu.memory_space<vmem>>, %arg7: memref<16x64xf32, #tpu.memory_space<vmem>>, %arg8: memref<64x512xf32, #tpu.memory_space<vmem>>, %arg9: memref<512x128xf32, #tpu.memory_space<vmem>>, %arg10: memref<1x128xf32, #tpu.memory_space<vmem>>, %arg11: memref<8x128xf32, #tpu.memory_space<vmem>>) attributes {dimension_semantics = [#tpu.dimension_semantics<parallel>], iteration_bounds = array<i64: 1>, scalar_prefetch = 0 : i64, scratch_operands = 0 : i64, tpu.core_type = #tpu.core_type<tc>, window_params = [{transform_indices = @transform_0, window_bounds = array<i64: 8, 128>}, {pipeline_mode = #tpu.pipeline_mode<synchronous>, transform_indices = @transform_1, window_bounds = array<i64: 128, 1536>}, {pipeline_mode = #tpu.pipeline_mode<synchronous>, transform_indices = @transform_2, window_bounds = array<i64: 1, 1536>}, {pipeline_mode = #tpu.pipeline_mode<synchronous>, transform_indices = @transform_3, window_bounds = array<i64: 512, 64>}, {pipeline_mode = #tpu.pipeline_mode<synchronous>, transform_indices = @transform_4, window_bounds = array<i64: 1, 64>}, {pipeline_mode = #tpu.pipeline_mode<synchronous>, transform_indices = @transform_5, window_bounds = array<i64: 64, 16>}, {pipeline_mode = #tpu.pipeline_mode<synchronous>, transform_indices = @transform_6, window_bounds = array<i64: 16, 64>}, {pipeline_mode = #tpu.pipeline_mode<synchronous>, transform_indices = @transform_7, window_bounds = array<i64: 64, 512>}, {pipeline_mode = #tpu.pipeline_mode<synchronous>, transform_indices = @transform_8, window_bounds = array<i64: 512, 128>}, {pipeline_mode = #tpu.pipeline_mode<synchronous>, transform_indices = @transform_9, window_bounds = array<i64: 1, 128>}, {transform_indices = @transform_10, window_bounds = array<i64: 8, 128>}]} {
    %c0 = arith.constant 0 : index
    %c0_0 = arith.constant 0 : index
    %0 = vector.load %arg1[%c0, %c0_0] : memref<8x128xf32, #tpu.memory_space<vmem>>, vector<8x128xf32>
    %c0_1 = arith.constant 0 : index
    %c0_2 = arith.constant 0 : index
    %1 = vector.load %arg2[%c0_1, %c0_2] : memref<128x1536xf32, #tpu.memory_space<vmem>>, vector<128x1536xf32>
    %cst = arith.constant dense<0.000000e+00> : vector<8x1536xf32>
    %2 = tpu.matmul %0, %1, %cst {dimension_numbers = #tpu.dot_dimension_numbers<[1], [0], [0], [1], [0, 0, 1, 1], [], []>} : vector<8x128xf32>, vector<128x1536xf32>, vector<8x1536xf32> -> vector<8x1536xf32>
    %c0_3 = arith.constant 0 : index
    %c0_4 = arith.constant 0 : index
    %3 = vector.load %arg3[%c0_3, %c0_4] : memref<1x1536xf32, #tpu.memory_space<vmem>>, vector<1x1536xf32>
    %4 = vector.broadcast %3 : vector<1x1536xf32> to vector<8x1536xf32>
    %5 = arith.addf %2, %4 : vector<8x1536xf32>
    %6 = vector.extract_strided_slice %5 {offsets = [0, 0], sizes = [8, 512], strides = [1, 1]} : vector<8x1536xf32> to vector<8x512xf32>
    %7 = vector.extract_strided_slice %5 {offsets = [0, 512], sizes = [8, 512], strides = [1, 1]} : vector<8x1536xf32> to vector<8x512xf32>
    %8 = vector.extract_strided_slice %5 {offsets = [0, 1024], sizes = [8, 512], strides = [1, 1]} : vector<8x1536xf32> to vector<8x512xf32>
    %9 = arith.mulf %6, %7 : vector<8x512xf32>
    %c0_5 = arith.constant 0 : index
    %c0_6 = arith.constant 0 : index
    %10 = vector.load %arg4[%c0_5, %c0_6] : memref<512x64xf32, #tpu.memory_space<vmem>>, vector<512x64xf32>
    %cst_7 = arith.constant dense<0.000000e+00> : vector<8x64xf32>
    %11 = tpu.matmul %9, %10, %cst_7 {dimension_numbers = #tpu.dot_dimension_numbers<[1], [0], [0], [1], [0, 0, 1, 1], [], []>} : vector<8x512xf32>, vector<512x64xf32>, vector<8x64xf32> -> vector<8x64xf32>
    %c0_8 = arith.constant 0 : index
    %c0_9 = arith.constant 0 : index
    %12 = vector.load %arg5[%c0_8, %c0_9] : memref<1x64xf32, #tpu.memory_space<vmem>>, vector<1x64xf32>
    %13 = vector.broadcast %12 : vector<1x64xf32> to vector<8x64xf32>
    %14 = arith.addf %11, %13 : vector<8x64xf32>
    %cst_10 = arith.constant dense<0xFF800000> : vector<8xf32>
    %15 = vector.multi_reduction <maximumf>, %14, %cst_10 [1] : vector<8x64xf32> to vector<8xf32>
    %16 = vector.shape_cast %15 : vector<8xf32> to vector<8x1xf32>
    %17 = vector.broadcast %16 : vector<8x1xf32> to vector<8x64xf32>
    %18 = arith.subf %14, %17 : vector<8x64xf32>
    %19 = math.exp %18 : vector<8x64xf32>
    %c0_11 = arith.constant 0 : index
    %c0_12 = arith.constant 0 : index
    %20 = vector.load %arg6[%c0_11, %c0_12] : memref<64x16xf32, #tpu.memory_space<vmem>>, vector<64x16xf32>
    %cst_13 = arith.constant dense<0.000000e+00> : vector<8x16xf32>
    %21 = tpu.matmul %19, %20, %cst_13 {dimension_numbers = #tpu.dot_dimension_numbers<[1], [0], [0], [1], [0, 0, 1, 1], [], []>} : vector<8x64xf32>, vector<64x16xf32>, vector<8x16xf32> -> vector<8x16xf32>
    %22 = tpu.reciprocal %21 {approx = true} : vector<8x16xf32> -> vector<8x16xf32>
    %c0_14 = arith.constant 0 : index
    %c0_15 = arith.constant 0 : index
    %23 = vector.load %arg7[%c0_14, %c0_15] : memref<16x64xf32, #tpu.memory_space<vmem>>, vector<16x64xf32>
    %cst_16 = arith.constant dense<0.000000e+00> : vector<8x64xf32>
    %24 = tpu.matmul %22, %23, %cst_16 {dimension_numbers = #tpu.dot_dimension_numbers<[1], [0], [0], [1], [0, 0, 1, 1], [], []>} : vector<8x16xf32>, vector<16x64xf32>, vector<8x64xf32> -> vector<8x64xf32>
    %25 = arith.mulf %19, %24 : vector<8x64xf32>
    %c0_17 = arith.constant 0 : index
    %c0_18 = arith.constant 0 : index
    %26 = vector.load %arg8[%c0_17, %c0_18] : memref<64x512xf32, #tpu.memory_space<vmem>>, vector<64x512xf32>
    %cst_19 = arith.constant dense<0.000000e+00> : vector<8x512xf32>
    %27 = tpu.matmul %25, %26, %cst_19 {dimension_numbers = #tpu.dot_dimension_numbers<[1], [0], [0], [1], [0, 0, 1, 1], [], []>} : vector<8x64xf32>, vector<64x512xf32>, vector<8x512xf32> -> vector<8x512xf32>
    %28 = arith.mulf %27, %8 : vector<8x512xf32>
    %c0_20 = arith.constant 0 : index
    %c0_21 = arith.constant 0 : index
    %29 = vector.load %arg9[%c0_20, %c0_21] : memref<512x128xf32, #tpu.memory_space<vmem>>, vector<512x128xf32>
    %cst_22 = arith.constant dense<0.000000e+00> : vector<8x128xf32>
    %30 = tpu.matmul %28, %29, %cst_22 {dimension_numbers = #tpu.dot_dimension_numbers<[1], [0], [0], [1], [0, 0, 1, 1], [], []>} : vector<8x512xf32>, vector<512x128xf32>, vector<8x128xf32> -> vector<8x128xf32>
    %c0_23 = arith.constant 0 : index
    %c0_24 = arith.constant 0 : index
    %31 = vector.load %arg10[%c0_23, %c0_24] : memref<1x128xf32, #tpu.memory_space<vmem>>, vector<1x128xf32>
    %32 = vector.broadcast %31 : vector<1x128xf32> to vector<8x128xf32>
    %33 = arith.addf %30, %32 : vector<8x128xf32>
    %c0_25 = arith.constant 0 : index
    %c0_26 = arith.constant 0 : index
    %34 = vector.load %arg11[%c0_25, %c0_26] : memref<8x128xf32, #tpu.memory_space<vmem>>, vector<8x128xf32>
    tpu.vector_store %arg11[%c0_25, %c0_26], %33 {strides = array<i32>} : memref<8x128xf32, #tpu.memory_space<vmem>>, vector<8x128xf32>,
    return
  }
  func.func @transform_0(%arg0: i32) -> (i32, i32) {
    %c0_i32 = arith.constant 0 : i32
    %c0_i32_0 = arith.constant 0 : i32
    return %arg0, %c0_i32 : i32, i32
  }
  func.func @transform_1(%arg0: i32) -> (i32, i32) {
    %c0_i32 = arith.constant 0 : i32
    %c0_i32_0 = arith.constant 0 : i32
    %c0_i32_1 = arith.constant 0 : i32
    return %c0_i32, %c0_i32_0 : i32, i32
  }
  func.func @transform_2(%arg0: i32) -> (i32, i32) {
    %c0_i32 = arith.constant 0 : i32
    %c0_i32_0 = arith.constant 0 : i32
    %c0_i32_1 = arith.constant 0 : i32
    return %c0_i32, %c0_i32_0 : i32, i32
  }
  func.func @transform_3(%arg0: i32) -> (i32, i32) {
    %c0_i32 = arith.constant 0 : i32
    %c0_i32_0 = arith.constant 0 : i32
    %c0_i32_1 = arith.constant 0 : i32
    return %c0_i32, %c0_i32_0 : i32, i32
  }
  func.func @transform_4(%arg0: i32) -> (i32, i32) {
    %c0_i32 = arith.constant 0 : i32
    %c0_i32_0 = arith.constant 0 : i32
    %c0_i32_1 = arith.constant 0 : i32
    return %c0_i32, %c0_i32_0 : i32, i32
  }
  func.func @transform_5(%arg0: i32) -> (i32, i32) {
    %c0_i32 = arith.constant 0 : i32
    %c0_i32_0 = arith.constant 0 : i32
    %c0_i32_1 = arith.constant 0 : i32
    return %c0_i32, %c0_i32_0 : i32, i32
  }
  func.func @transform_6(%arg0: i32) -> (i32, i32) {
    %c0_i32 = arith.constant 0 : i32
    %c0_i32_0 = arith.constant 0 : i32
    %c0_i32_1 = arith.constant 0 : i32
    return %c0_i32, %c0_i32_0 : i32, i32
  }
  func.func @transform_7(%arg0: i32) -> (i32, i32) {
    %c0_i32 = arith.constant 0 : i32
    %c0_i32_0 = arith.constant 0 : i32
    %c0_i32_1 = arith.constant 0 : i32
    return %c0_i32, %c0_i32_0 : i32, i32
  }
  func.func @transform_8(%arg0: i32) -> (i32, i32) {
    %c0_i32 = arith.constant 0 : i32
    %c0_i32_0 = arith.constant 0 : i32
    %c0_i32_1 = arith.constant 0 : i32
    return %c0_i32, %c0_i32_0 : i32, i32
  }
  func.func @transform_9(%arg0: i32) -> (i32, i32) {
    %c0_i32 = arith.constant 0 : i32
    %c0_i32_0 = arith.constant 0 : i32
    %c0_i32_1 = arith.constant 0 : i32
    return %c0_i32, %c0_i32_0 : i32, i32
  }
  func.func @transform_10(%arg0: i32) -> (i32, i32) {
    %c0_i32 = arith.constant 0 : i32
    %c0_i32_0 = arith.constant 0 : i32
    return %arg0, %c0_i32 : i32, i32
  }
}

</mosaic_0001>

<bundles_post_ra>
// kernel: tpu_custom_call.1
= control target key start
LH: loop header
LB: loop body
LE: loop exit
PB: predicated region body
PF: predicated region fallthrough
CT: control target
= control target key end

     0   :  { %15 = vsyncpa [#allocation3], 0  ;;  %s1710_s0 = inlined_call_operand.vmem [shape: f32[8,128], index: 0, kind: input, shape index: {}]   ;;  %s1711_s1 = inlined_call_operand.hbm [shape: f32[128,1536], index: 1, kind: input, shape index: {}]   ;;  %s1712_s2 = inlined_call_operand.vmem [shape: f32[1,1536], index: 2, kind: input, shape index: {}]   ;;  %s1713_s3 = inlined_call_operand.vmem [shape: f32[512,64], index: 3, kind: input, shape index: {}]   ;;  %s1714_s4 = inlined_call_operand.vmem [shape: f32[1,64], index: 4, kind: input, shape index: {}]   ;;  %s1715_s5 = inlined_call_operand.vmem [shape: f32[64,16], index: 5, kind: input, shape index: {}]   ;;  %s1716_s6 = inlined_call_operand.vmem [shape: f32[16,64], index: 6, kind: input, shape index: {}]   ;;  %s1717_s7 = inlined_call_operand.vmem [shape: f32[64,512], index: 7, kind: input, shape index: {}]   ;;  %s1718_s8 = inlined_call_operand.vmem [shape: f32[512,128], index: 8, kind: input, shape index: {}]   ;;  %s1719_s9 = inlined_call_operand.vmem [shape: f32[1,128], index: 9, kind: input, shape index: {}]   ;;  %s1720_s10 = inlined_call_operand.hbm [shape: f32[8,128], index: 10, kind: output, shape index: {}]  }
   0x1   :  { %16 = vsyncpa [#allocation4], 0  ;;  %s23_s15 = sshll.u32 %s1711_s1, 4  ;;  %s1084_s16 = smov [#allocation2]   ;;  %s24_s15 = int_to_ptr.hbm [resolvable:$true] %s23_s15 }
   0x2   :  { %s25_s17 = sshll.u32 %s1084_s16, 4  ;;  %s1085_s18 = smov 1536   ;;  %s26_s17 = int_to_ptr.vmem [resolvable:$true] %s25_s17 }
   0x3   :  { %s1086_s19 = smov 96  }
   0x4   :  { %31 = dma.hbm_to_vmem [thread:$0]  %s24_s15, 24576, %s26_s17, [#allocation3], %s1085_s18, %s1085_s18, %s1086_s19  }
   0x5   :  { %1080 = dma.done.wait [#allocation3], 24576  }
   0x6   :  { %1081 = vsyncadd [#allocation3], 4294942720  ;;  %v233_v0 = vld [vmem:[#allocation2 + $0x5a0] sm:$0xff]  ;;  %v235_v1 = vld [vmem:[#allocation2 + $0x5b0] sm:$0xff]  ;;  %vm665_vm0 = vcmask 523264   ;;  %vm706_vm1 = vcmask 130048  }
   0x7   :  { %v236_v2 = vld [vmem:[#allocation2 + $0x5b8] sm:$0xff]  ;;  %273 = vmatpush.msra.mxu0 %v233_v0  ;;  %313 = vmatpush.msra.mxu2 %v235_v1  ;;  %v221_v3 = vld [vmem:[#allocation2 + $0x540] sm:$0xff]  ;;  %v234_v4 = vld [vmem:[#allocation2 + $0x5a8] sm:$0xff]  ;;  %s1087_s21 = smov [#allocation5]   ;;  %s1006_s24 = sshll.u32 %s1720_s10, 4  ;;  %s1007_s24 = int_to_ptr.hbm [resolvable:$true] %s1006_s24 }
   0x8   :  { %v223_v5 = vld [vmem:[#allocation2 + $0x550] sm:$0xff]  ;;  %333 = vmatpush.msra.mxu3 %v236_v2  ;;  %293 = vmatpush.msra.mxu1 %v234_v4  ;;  %v224_v6 = vld [vmem:[#allocation2 + $0x558] sm:$0xff]  ;;  %v209_v7 = vld [vmem:[#allocation2 + $0x4e0] sm:$0xff] }
   0x9   :  { %v222_v8 = vld [vmem:[#allocation2 + $0x548] sm:$0xff]  ;;  %274 = vmatpush.msra.mxu0 %v221_v3  ;;  %314 = vmatpush.msra.mxu2 %v223_v5  ;;  %v211_v9 = vld [vmem:[#allocation2 + $0x4f0] sm:$0xff]  ;;  %v212_v10 = vld [vmem:[#allocation2 + $0x4f8] sm:$0xff] }
   0xa   :  { %334 = vmatpush.msra.mxu3 %v224_v6  ;;  %294 = vmatpush.msra.mxu1 %v222_v8  ;;  %v197_v11 = vld [vmem:[#allocation2 + $0x480] sm:$0xff]  ;;  %v210_v12 = vld [vmem:[#allocation2 + $0x4e8] sm:$0xff]  ;;  %v199_v13 = vld [vmem:[#allocation2 + $0x490] sm:$0xff] }
   0xb   :  { %275 = vmatpush.msra.mxu0 %v209_v7  ;;  %315 = vmatpush.msra.mxu2 %v211_v9  ;;  %v200_v14 = vld [vmem:[#allocation2 + $0x498] sm:$0xff]  ;;  %v198_v15 = vld [vmem:[#allocation2 + $0x488] sm:$0xff]  ;;  %v185_v16 = vld [vmem:[#allocation2 + $0x420] sm:$0xff] }
   0xc   :  { %335 = vmatpush.msra.mxu3 %v212_v10  ;;  %295 = vmatpush.msra.mxu1 %v210_v12  ;;  %v187_v17 = vld [vmem:[#allocation2 + $0x430] sm:$0xff]  ;;  %v188_v18 = vld [vmem:[#allocation2 + $0x438] sm:$0xff]  ;;  %v186_v19 = vld [vmem:[#allocation2 + $0x428] sm:$0xff] }
   0xd   :  { %276 = vmatpush.msra.mxu0 %v197_v11  ;;  %316 = vmatpush.msra.mxu2 %v199_v13  ;;  %v173_v20 = vld [vmem:[#allocation2 + $0x3c0] sm:$0xff]  ;;  %v175_v21 = vld [vmem:[#allocation2 + $0x3d0] sm:$0xff]  ;;  %v176_v22 = vld [vmem:[#allocation2 + $0x3d8] sm:$0xff] }
   0xe   :  { %336 = vmatpush.msra.mxu3 %v200_v14  ;;  %296 = vmatpush.msra.mxu1 %v198_v15  ;;  %v174_v23 = vld [vmem:[#allocation2 + $0x3c8] sm:$0xff]  ;;  %v161_v24 = vld [vmem:[#allocation2 + $0x360] sm:$0xff]  ;;  %v163_v25 = vld [vmem:[#allocation2 + $0x370] sm:$0xff] }
   0xf   :  { %277 = vmatpush.msra.mxu0 %v185_v16  ;;  %317 = vmatpush.msra.mxu2 %v187_v17  ;;  %v164_v26 = vld [vmem:[#allocation2 + $0x378] sm:$0xff]  ;;  %v162_v27 = vld [vmem:[#allocation2 + $0x368] sm:$0xff]  ;;  %v149_v28 = vld [vmem:[#allocation2 + $0x300] sm:$0xff] }
  0x10   :  { %337 = vmatpush.msra.mxu3 %v188_v18  ;;  %297 = vmatpush.msra.mxu1 %v186_v19  ;;  %v151_v29 = vld [vmem:[#allocation2 + $0x310] sm:$0xff]  ;;  %v152_v30 = vld [vmem:[#allocation2 + $0x318] sm:$0xff]  ;;  %v150_v31 = vld [vmem:[#allocation2 + $0x308] sm:$0xff] }
  0x11   :  { %278 = vmatpush.msra.mxu0 %v173_v20  ;;  %318 = vmatpush.msra.mxu2 %v175_v21  ;;  %v137_v32 = vld [vmem:[#allocation2 + $0x2a0] sm:$0xff]  ;;  %v139_v33 = vld [vmem:[#allocation2 + $0x2b0] sm:$0xff]  ;;  %v140_v34 = vld [vmem:[#allocation2 + $0x2b8] sm:$0xff] }
  0x12   :  { %338 = vmatpush.msra.mxu3 %v176_v22  ;;  %298 = vmatpush.msra.mxu1 %v174_v23  ;;  %v138_v35 = vld [vmem:[#allocation2 + $0x2a8] sm:$0xff]  ;;  %v125_v36 = vld [vmem:[#allocation2 + $0x240] sm:$0xff]  ;;  %v127_v37 = vld [vmem:[#allocation2 + $0x250] sm:$0xff] }
  0x13   :  { %279 = vmatpush.msra.mxu0 %v161_v24  ;;  %319 = vmatpush.msra.mxu2 %v163_v25  ;;  %v128_v38 = vld [vmem:[#allocation2 + $0x258] sm:$0xff]  ;;  %v126_v39 = vld [vmem:[#allocation2 + $0x248] sm:$0xff]  ;;  %v113_v40 = vld [vmem:[#allocation2 + $0x1e0] sm:$0xff] }
  0x14   :  { %339 = vmatpush.msra.mxu3 %v164_v26  ;;  %299 = vmatpush.msra.mxu1 %v162_v27  ;;  %v115_v41 = vld [vmem:[#allocation2 + $0x1f0] sm:$0xff]  ;;  %v116_v42 = vld [vmem:[#allocation2 + $0x1f8] sm:$0xff]  ;;  %v114_v43 = vld [vmem:[#allocation2 + $0x1e8] sm:$0xff] }
  0x15   :  { %280 = vmatpush.msra.mxu0 %v149_v28  ;;  %320 = vmatpush.msra.mxu2 %v151_v29  ;;  %v101_v44 = vld [vmem:[#allocation2 + $0x180] sm:$0xff]  ;;  %v103_v45 = vld [vmem:[#allocation2 + $0x190] sm:$0xff]  ;;  %v104_v46 = vld [vmem:[#allocation2 + $0x198] sm:$0xff] }
  0x16   :  { %340 = vmatpush.msra.mxu3 %v152_v30  ;;  %300 = vmatpush.msra.mxu1 %v150_v31  ;;  %v102_v47 = vld [vmem:[#allocation2 + $0x188] sm:$0xff]  ;;  %v89_v48 = vld [vmem:[#allocation2 + $0x120] sm:$0xff]  ;;  %v91_v49 = vld [vmem:[#allocation2 + $0x130] sm:$0xff] }
  0x17   :  { %281 = vmatpush.msra.mxu0 %v137_v32  ;;  %321 = vmatpush.msra.mxu2 %v139_v33  ;;  %v92_v50 = vld [vmem:[#allocation2 + $0x138] sm:$0xff]  ;;  %v90_v51 = vld [vmem:[#allocation2 + $0x128] sm:$0xff]  ;;  %v77_v52 = vld [vmem:[#allocation2 + $0xc0] sm:$0xff] }
  0x18   :  { %341 = vmatpush.msra.mxu3 %v140_v34  ;;  %301 = vmatpush.msra.mxu1 %v138_v35  ;;  %v79_v53 = vld [vmem:[#allocation2 + $0xd0] sm:$0xff]  ;;  %v80_v54 = vld [vmem:[#allocation2 + $0xd8] sm:$0xff]  ;;  %v78_v55 = vld [vmem:[#allocation2 + $0xc8] sm:$0xff] }
  0x19   :  { %282 = vmatpush.msra.mxu0 %v125_v36  ;;  %322 = vmatpush.msra.mxu2 %v127_v37  ;;  %v65_v56 = vld [vmem:[#allocation2 + $0x60] sm:$0xff]  ;;  %v67_v57 = vld [vmem:[#allocation2 + $0x70] sm:$0xff]  ;;  %v68_v58 = vld [vmem:[#allocation2 + $0x78] sm:$0xff] }
  0x1a   :  { %342 = vmatpush.msra.mxu3 %v128_v38  ;;  %302 = vmatpush.msra.mxu1 %v126_v39  ;;  %v66_v59 = vld [vmem:[#allocation2 + $0x68] sm:$0xff]  ;;  %v53_v60 = vld [vmem:[#allocation2] sm:$0xff]  ;;  %v55_v61 = vld [vmem:[#allocation2 + $0x10] sm:$0xff] }
  0x1b   :  { %283 = vmatpush.msra.mxu0 %v113_v40  ;;  %323 = vmatpush.msra.mxu2 %v115_v41  ;;  %v56_v62 = vld [vmem:[#allocation2 + $0x18] sm:$0xff]  ;;  %v237_v63 = vld [vmem:[#allocation2 + $0x5c0] sm:$0xff]  ;;  %v239_v0 = vld [vmem:[#allocation2 + $0x5d0] sm:$0xff] }
  0x1c   :  { %343 = vmatpush.msra.mxu3 %v116_v42  ;;  %303 = vmatpush.msra.mxu1 %v114_v43  ;;  %v240_v1 = vld [vmem:[#allocation2 + $0x5d8] sm:$0xff]  ;;  %v54_v2 = vld [vmem:[#allocation2 + $0x8] sm:$0xff]  ;;  %v225_v3 = vld [vmem:[#allocation2 + $0x560] sm:$0xff] }
  0x1d   :  { %284 = vmatpush.msra.mxu0 %v101_v44  ;;  %324 = vmatpush.msra.mxu2 %v103_v45  ;;  %v238_v4 = vld [vmem:[#allocation2 + $0x5c8] sm:$0xff]  ;;  %v227_v5 = vld [vmem:[#allocation2 + $0x570] sm:$0xff]  ;;  %v228_v6 = vld [vmem:[#allocation2 + $0x578] sm:$0xff] }
  0x1e   :  { %344 = vmatpush.msra.mxu3 %v104_v46  ;;  %304 = vmatpush.msra.mxu1 %v102_v47  ;;  %v213_v7 = vld [vmem:[#allocation2 + $0x500] sm:$0xff]  ;;  %v226_v8 = vld [vmem:[#allocation2 + $0x568] sm:$0xff]  ;;  %v215_v9 = vld [vmem:[#allocation2 + $0x510] sm:$0xff] }
  0x1f   :  { %285 = vmatpush.msra.mxu0 %v89_v48  ;;  %325 = vmatpush.msra.mxu2 %v91_v49  ;;  %v216_v10 = vld [vmem:[#allocation2 + $0x518] sm:$0xff]  ;;  %v201_v11 = vld [vmem:[#allocation2 + $0x4a0] sm:$0xff]  ;;  %v214_v12 = vld [vmem:[#allocation2 + $0x508] sm:$0xff] }
  0x20   :  { %345 = vmatpush.msra.mxu3 %v92_v50  ;;  %305 = vmatpush.msra.mxu1 %v90_v51  ;;  %v203_v13 = vld [vmem:[#allocation2 + $0x4b0] sm:$0xff]  ;;  %v204_v14 = vld [vmem:[#allocation2 + $0x4b8] sm:$0xff]  ;;  %v189_v15 = vld [vmem:[#allocation2 + $0x440] sm:$0xff] }
  0x21   :  { %286 = vmatpush.msra.mxu0 %v77_v52  ;;  %326 = vmatpush.msra.mxu2 %v79_v53  ;;  %v202_v16 = vld [vmem:[#allocation2 + $0x4a8] sm:$0xff]  ;;  %v191_v17 = vld [vmem:[#allocation2 + $0x450] sm:$0xff]  ;;  %v192_v18 = vld [vmem:[#allocation2 + $0x458] sm:$0xff] }
  0x22   :  { %346 = vmatpush.msra.mxu3 %v80_v54  ;;  %306 = vmatpush.msra.mxu1 %v78_v55  ;;  %v177_v19 = vld [vmem:[#allocation2 + $0x3e0] sm:$0xff]  ;;  %v190_v20 = vld [vmem:[#allocation2 + $0x448] sm:$0xff]  ;;  %v179_v21 = vld [vmem:[#allocation2 + $0x3f0] sm:$0xff] }
  0x23   :  { %287 = vmatpush.msra.mxu0 %v65_v56  ;;  %327 = vmatpush.msra.mxu2 %v67_v57  ;;  %v180_v22 = vld [vmem:[#allocation2 + $0x3f8] sm:$0xff]  ;;  %v165_v23 = vld [vmem:[#allocation2 + $0x380] sm:$0xff]  ;;  %v178_v24 = vld [vmem:[#allocation2 + $0x3e8] sm:$0xff] }
  0x24   :  { %347 = vmatpush.msra.mxu3 %v68_v58  ;;  %307 = vmatpush.msra.mxu1 %v66_v59  ;;  %v167_v25 = vld [vmem:[#allocation2 + $0x390] sm:$0xff]  ;;  %v168_v26 = vld [vmem:[#allocation2 + $0x398] sm:$0xff]  ;;  %v153_v27 = vld [vmem:[#allocation2 + $0x320] sm:$0xff] }
  0x25   :  { %288 = vmatpush.msra.mxu0 %v53_v60  ;;  %328 = vmatpush.msra.mxu2 %v55_v61  ;;  %v166_v28 = vld [vmem:[#allocation2 + $0x388] sm:$0xff]  ;;  %v155_v29 = vld [vmem:[#allocation2 + $0x330] sm:$0xff]  ;;  %v156_v30 = vld [vmem:[#allocation2 + $0x338] sm:$0xff] }
  0x26   :  { %348 = vmatpush.msra.mxu3 %v56_v62  ;;  %308 = vmatpush.msra.mxu1 %v54_v2  ;;  %v141_v31 = vld [vmem:[#allocation2 + $0x2c0] sm:$0xff]  ;;  %v154_v32 = vld [vmem:[#allocation2 + $0x328] sm:$0xff]  ;;  %v143_v33 = vld [vmem:[#allocation2 + $0x2d0] sm:$0xff] }
  0x27   :  { %353 = vmatpush.msrb.mxu0 %v237_v63  ;;  %393 = vmatpush.msrb.mxu2 %v239_v0  ;;  %v144_v34 = vld [vmem:[#allocation2 + $0x2d8] sm:$0xff]  ;;  %v129_v35 = vld [vmem:[#allocation2 + $0x260] sm:$0xff]  ;;  %v142_v36 = vld [vmem:[#allocation2 + $0x2c8] sm:$0xff] }
  0x28   :  { %413 = vmatpush.msrb.mxu3 %v240_v1  ;;  %373 = vmatpush.msrb.mxu1 %v238_v4  ;;  %v131_v37 = vld [vmem:[#allocation2 + $0x270] sm:$0xff]  ;;  %v132_v38 = vld [vmem:[#allocation2 + $0x278] sm:$0xff]  ;;  %v117_v39 = vld [vmem:[#allocation2 + $0x200] sm:$0xff] }
  0x29   :  { %354 = vmatpush.msrb.mxu0 %v225_v3  ;;  %394 = vmatpush.msrb.mxu2 %v227_v5  ;;  %v130_v40 = vld [vmem:[#allocation2 + $0x268] sm:$0xff]  ;;  %v119_v41 = vld [vmem:[#allocation2 + $0x210] sm:$0xff]  ;;  %v120_v42 = vld [vmem:[#allocation2 + $0x218] sm:$0xff] }
  0x2a   :  { %414 = vmatpush.msrb.mxu3 %v228_v6  ;;  %374 = vmatpush.msrb.mxu1 %v226_v8  ;;  %v105_v43 = vld [vmem:[#allocation2 + $0x1a0] sm:$0xff]  ;;  %v118_v44 = vld [vmem:[#allocation2 + $0x208] sm:$0xff]  ;;  %v107_v45 = vld [vmem:[#allocation2 + $0x1b0] sm:$0xff] }
  0x2b   :  { %355 = vmatpush.msrb.mxu0 %v213_v7  ;;  %395 = vmatpush.msrb.mxu2 %v215_v9  ;;  %v108_v46 = vld [vmem:[#allocation2 + $0x1b8] sm:$0xff]  ;;  %v1149_v47 = vld [vmem:[%s1710_s0] sm:$0xff]  ;;  %v106_v49 = vld [vmem:[#allocation2 + $0x1a8] sm:$0xff] }
  0x2c   :  { %415 = vmatpush.msrb.mxu3 %v216_v10  ;;  %375 = vmatpush.msrb.mxu1 %v214_v12  ;;  %v93_v48 = vld [vmem:[#allocation2 + $0x140] sm:$0xff]  ;;  %v95_v50 = vld [vmem:[#allocation2 + $0x150] sm:$0xff]  ;;  %v96_v51 = vld [vmem:[#allocation2 + $0x158] sm:$0xff] }
  0x2d   :  { %356 = vmatpush.msrb.mxu0 %v201_v11  ;;  %396 = vmatpush.msrb.mxu2 %v203_v13  ;;  %v81_v52 = vld [vmem:[#allocation2 + $0xe0] sm:$0xff]  ;;  %v94_v53 = vld [vmem:[#allocation2 + $0x148] sm:$0xff]  ;;  %v83_v54 = vld [vmem:[#allocation2 + $0xf0] sm:$0xff] }
  0x2e   :  { %416 = vmatpush.msrb.mxu3 %v204_v14  ;;  %376 = vmatpush.msrb.mxu1 %v202_v16  ;;  %v84_v55 = vld [vmem:[#allocation2 + $0xf8] sm:$0xff]  ;;  %v69_v56 = vld [vmem:[#allocation2 + $0x80] sm:$0xff]  ;;  %v82_v57 = vld [vmem:[#allocation2 + $0xe8] sm:$0xff] }
  0x2f   :  { %357 = vmatpush.msrb.mxu0 %v189_v15  ;;  %397 = vmatpush.msrb.mxu2 %v191_v17  ;;  %v71_v58 = vld [vmem:[#allocation2 + $0x90] sm:$0xff]  ;;  %v72_v59 = vld [vmem:[#allocation2 + $0x98] sm:$0xff]  ;;  %v57_v60 = vld [vmem:[#allocation2 + $0x20] sm:$0xff] }
  0x30   :  { %417 = vmatpush.msrb.mxu3 %v192_v18  ;;  %377 = vmatpush.msrb.mxu1 %v190_v20  ;;  %v70_v61 = vld [vmem:[#allocation2 + $0x88] sm:$0xff]  ;;  %v59_v62 = vld [vmem:[#allocation2 + $0x30] sm:$0xff]  ;;  %v60_v63 = vld [vmem:[#allocation2 + $0x38] sm:$0xff] }
  0x31   :  { %358 = vmatpush.msrb.mxu0 %v177_v19  ;;  %398 = vmatpush.msrb.mxu2 %v179_v21  ;;  %v58_v0 = vld [vmem:[#allocation2 + $0x28] sm:$0xff]  ;;  %v241_v1 = vld [vmem:[#allocation2 + $0x5e0] sm:$0xff]  ;;  %v243_v2 = vld [vmem:[#allocation2 + $0x5f0] sm:$0xff] }
  0x32   :  { %418 = vmatpush.msrb.mxu3 %v180_v22  ;;  %378 = vmatpush.msrb.mxu1 %v178_v24  ;;  %v229_v3 = vld [vmem:[#allocation2 + $0x580] sm:$0xff]  ;;  %v242_v4 = vld [vmem:[#allocation2 + $0x5e8] sm:$0xff]  ;;  %v244_v5 = vld [vmem:[#allocation2 + $0x5f8] sm:$0xff] }
  0x33   :  { %359 = vmatpush.msrb.mxu0 %v165_v23  ;;  %399 = vmatpush.msrb.mxu2 %v167_v25  ;;  %v231_v6 = vld [vmem:[#allocation2 + $0x590] sm:$0xff]  ;;  %v217_v7 = vld [vmem:[#allocation2 + $0x520] sm:$0xff]  ;;  %v230_v8 = vld [vmem:[#allocation2 + $0x588] sm:$0xff] }
  0x34   :  { %419 = vmatpush.msrb.mxu3 %v168_v26  ;;  %379 = vmatpush.msrb.mxu1 %v166_v28  ;;  %v232_v9 = vld [vmem:[#allocation2 + $0x598] sm:$0xff]  ;;  %v219_v10 = vld [vmem:[#allocation2 + $0x530] sm:$0xff]  ;;  %v205_v11 = vld [vmem:[#allocation2 + $0x4c0] sm:$0xff] }
  0x35   :  { %360 = vmatpush.msrb.mxu0 %v153_v27  ;;  %400 = vmatpush.msrb.mxu2 %v155_v29  ;;  %v218_v12 = vld [vmem:[#allocation2 + $0x528] sm:$0xff]  ;;  %v220_v13 = vld [vmem:[#allocation2 + $0x538] sm:$0xff]  ;;  %v207_v14 = vld [vmem:[#allocation2 + $0x4d0] sm:$0xff] }
  0x36   :  { %420 = vmatpush.msrb.mxu3 %v156_v30  ;;  %380 = vmatpush.msrb.mxu1 %v154_v32  ;;  %v193_v15 = vld [vmem:[#allocation2 + $0x460] sm:$0xff]  ;;  %v206_v16 = vld [vmem:[#allocation2 + $0x4c8] sm:$0xff]  ;;  %v208_v17 = vld [vmem:[#allocation2 + $0x4d8] sm:$0xff] }
  0x37   :  { %361 = vmatpush.msrb.mxu0 %v141_v31  ;;  %401 = vmatpush.msrb.mxu2 %v143_v33  ;;  %v195_v18 = vld [vmem:[#allocation2 + $0x470] sm:$0xff]  ;;  %v181_v19 = vld [vmem:[#allocation2 + $0x400] sm:$0xff]  ;;  %v194_v20 = vld [vmem:[#allocation2 + $0x468] sm:$0xff] }
  0x38   :  { %421 = vmatpush.msrb.mxu3 %v144_v34  ;;  %381 = vmatpush.msrb.mxu1 %v142_v36  ;;  %v196_v21 = vld [vmem:[#allocation2 + $0x478] sm:$0xff]  ;;  %v183_v22 = vld [vmem:[#allocation2 + $0x410] sm:$0xff]  ;;  %v169_v23 = vld [vmem:[#allocation2 + $0x3a0] sm:$0xff] }
  0x39   :  { %362 = vmatpush.msrb.mxu0 %v129_v35  ;;  %402 = vmatpush.msrb.mxu2 %v131_v37  ;;  %v182_v24 = vld [vmem:[#allocation2 + $0x408] sm:$0xff]  ;;  %v184_v25 = vld [vmem:[#allocation2 + $0x418] sm:$0xff]  ;;  %v171_v26 = vld [vmem:[#allocation2 + $0x3b0] sm:$0xff] }
  0x3a   :  { %422 = vmatpush.msrb.mxu3 %v132_v38  ;;  %382 = vmatpush.msrb.mxu1 %v130_v40  ;;  %v157_v27 = vld [vmem:[#allocation2 + $0x340] sm:$0xff]  ;;  %v170_v28 = vld [vmem:[#allocation2 + $0x3a8] sm:$0xff]  ;;  %v172_v29 = vld [vmem:[#allocation2 + $0x3b8] sm:$0xff] }
  0x3b   :  { %363 = vmatpush.msrb.mxu0 %v117_v39  ;;  %403 = vmatpush.msrb.mxu2 %v119_v41  ;;  %v159_v30 = vld [vmem:[#allocation2 + $0x350] sm:$0xff]  ;;  %v145_v31 = vld [vmem:[#allocation2 + $0x2e0] sm:$0xff]  ;;  %v158_v32 = vld [vmem:[#allocation2 + $0x348] sm:$0xff] }
  0x3c   :  { %423 = vmatpush.msrb.mxu3 %v120_v42  ;;  %383 = vmatpush.msrb.mxu1 %v118_v44  ;;  %v160_v33 = vld [vmem:[#allocation2 + $0x358] sm:$0xff]  ;;  %v147_v34 = vld [vmem:[#allocation2 + $0x2f0] sm:$0xff]  ;;  %v133_v35 = vld [vmem:[#allocation2 + $0x280] sm:$0xff] }
  0x3d   :  { %364 = vmatpush.msrb.mxu0 %v105_v43  ;;  %404 = vmatpush.msrb.mxu2 %v107_v45  ;;  %v146_v36 = vld [vmem:[#allocation2 + $0x2e8] sm:$0xff]  ;;  %v148_v37 = vld [vmem:[#allocation2 + $0x2f8] sm:$0xff]  ;;  %v135_v38 = vld [vmem:[#allocation2 + $0x290] sm:$0xff] }
  0x3e   :  { %424 = vmatpush.msrb.mxu3 %v108_v46  ;;  %289 = vmatmul.f32.vlgmr.msra.gmra.mxu0 %v1149_v47  ;;  %v121_v39 = vld [vmem:[#allocation2 + $0x220] sm:$0xff]  ;;  %v134_v40 = vld [vmem:[#allocation2 + $0x288] sm:$0xff]  ;;  %v136_v41 = vld [vmem:[#allocation2 + $0x298] sm:$0xff] }
  0x3f   :  { %329 = vmatmul.f32.vlgmr.msra.gmra.mxu2 %v1149_v47  ;;  %349 = vmatmul.f32.vlgmr.msra.gmra.mxu3 %v1149_v47  ;;  %v123_v42 = vld [vmem:[#allocation2 + $0x230] sm:$0xff]  ;;  %v109_v43 = vld [vmem:[#allocation2 + $0x1c0] sm:$0xff]  ;;  %v122_v44 = vld [vmem:[#allocation2 + $0x228] sm:$0xff] }
  0x40   :  { %365 = vmatpush.msrb.mxu0 %v93_v48  ;;  %384 = vmatpush.msrb.mxu1 %v106_v49  ;;  %v124_v45 = vld [vmem:[#allocation2 + $0x238] sm:$0xff]  ;;  %v111_v46 = vld [vmem:[#allocation2 + $0x1d0] sm:$0xff]  ;;  %v97_v48 = vld [vmem:[#allocation2 + $0x160] sm:$0xff] }
  0x41   :  { %405 = vmatpush.msrb.mxu2 %v95_v50  ;;  %425 = vmatpush.msrb.mxu3 %v96_v51  ;;  %v110_v49 = vld [vmem:[#allocation2 + $0x1c8] sm:$0xff]  ;;  %v112_v50 = vld [vmem:[#allocation2 + $0x1d8] sm:$0xff]  ;;  %v99_v51 = vld [vmem:[#allocation2 + $0x170] sm:$0xff] }
  0x42   :  { %309 = vmatmul.f32.vlgmr.msra.gmra.mxu1 %v1149_v47  ;;  %366 = vmatpush.msrb.mxu0 %v81_v52  ;;  %v85_v52 = vld [vmem:[#allocation2 + $0x100] sm:$0xff] }
  0x43   :  { %385 = vmatpush.msrb.mxu1 %v94_v53  ;;  %406 = vmatpush.msrb.mxu2 %v83_v54  ;;  %v98_v53 = vld [vmem:[#allocation2 + $0x168] sm:$0xff]  ;;  %v100_v54 = vld [vmem:[#allocation2 + $0x178] sm:$0xff] }
  0x44   :  { %426 = vmatpush.msrb.mxu3 %v84_v55  ;;  %367 = vmatpush.msrb.mxu0 %v69_v56  ;;  %v87_v55 = vld [vmem:[#allocation2 + $0x110] sm:$0xff]  ;;  %v73_v56 = vld [vmem:[#allocation2 + $0xa0] sm:$0xff] }
  0x45   :  { %386 = vmatpush.msrb.mxu1 %v82_v57  ;;  %407 = vmatpush.msrb.mxu2 %v71_v58  ;;  %v86_v57 = vld [vmem:[#allocation2 + $0x108] sm:$0xff]  ;;  %v88_v58 = vld [vmem:[#allocation2 + $0x118] sm:$0xff] }
  0x46   :  { %427 = vmatpush.msrb.mxu3 %v72_v59  ;;  %368 = vmatpush.msrb.mxu0 %v57_v60  ;;  %v75_v59 = vld [vmem:[#allocation2 + $0xb0] sm:$0xff]  ;;  %v61_v60 = vld [vmem:[#allocation2 + $0x40] sm:$0xff] }
  0x47   :  { %387 = vmatpush.msrb.mxu1 %v70_v61  ;;  %408 = vmatpush.msrb.mxu2 %v59_v62  ;;  %v74_v61 = vld [vmem:[#allocation2 + $0xa8] sm:$0xff]  ;;  %v532_v62 = vld [vmem:[%s1713_s3 + $0x78] sm:$0xff] }
  0x48   :  { %428 = vmatpush.msrb.mxu3 %v60_v63  ;;  %369 = vmatmul.f32.vlgmr.msrb.gmra.mxu0 %v1149_v47  ;;  %v76_v63 = vld [vmem:[#allocation2 + $0xb8] sm:$0xff] }
  0x49   :  { %409 = vmatmul.f32.vlgmr.msrb.gmra.mxu2 %v1149_v47  ;;  %429 = vmatmul.f32.vlgmr.msrb.gmra.mxu3 %v1149_v47 }
  0x4a   :  { %388 = vmatpush.msrb.mxu1 %v58_v0  ;;  %433 = vmatpush.msra.mxu0 %v241_v1  ;;  %v62_v0 = vld [vmem:[#allocation2 + $0x48] sm:$0xff]  ;;  %v63_v1 = vld [vmem:[#allocation2 + $0x50] sm:$0xff] }
  0x4b   :  { %389 = vmatmul.f32.vlgmr.msrb.gmra.mxu1 %v1149_v47  ;;  %473 = vmatpush.msra.mxu2 %v243_v2  ;;  %v531_v2 = vld [vmem:[%s1713_s3 + $0x70] sm:$0xff] }
  0x4c   :  { %434 = vmatpush.msra.mxu0 %v229_v3  ;;  %453 = vmatpush.msra.mxu1 %v242_v4  ;;  %v548_v3 = vld [vmem:[%s1713_s3 + $0xf8] sm:$0xff] }
  0x4d   :  { %493 = vmatpush.msra.mxu3 %v244_v5  ;;  %474 = vmatpush.msra.mxu2 %v231_v6  ;;  %v64_v4 = vld [vmem:[#allocation2 + $0x58] sm:$0xff]  ;;  %v530_v6 = vld [vmem:[%s1713_s3 + $0x68] sm:$0xff] }
  0x4e   :  { %435 = vmatpush.msra.mxu0 %v217_v7  ;;  %454 = vmatpush.msra.mxu1 %v230_v8  ;;  %v564_v5 = vld [vmem:[%s1713_s3 + $0x178] sm:$0xff]  ;;  %v547_v7 = vld [vmem:[%s1713_s3 + $0xf0] sm:$0xff] }
  0x4f   :  { %494 = vmatpush.msra.mxu3 %v232_v9  ;;  %475 = vmatpush.msra.mxu2 %v219_v10  ;;  %v580_v8 = vld [vmem:[%s1713_s3 + $0x1f8] sm:$0xff]  ;;  %v563_v9 = vld [vmem:[%s1713_s3 + $0x170] sm:$0xff]  ;;  %v529_v10 = vld [vmem:[%s1713_s3 + $0x60] sm:$0xff] }
  0x50   :  { %436 = vmatpush.msra.mxu0 %v205_v11  ;;  %455 = vmatpush.msra.mxu1 %v218_v12  ;;  %v546_v11 = vld [vmem:[%s1713_s3 + $0xe8] sm:$0xff]  ;;  %v579_v12 = vld [vmem:[%s1713_s3 + $0x1f0] sm:$0xff] }
  0x51   :  { %495 = vmatpush.msra.mxu3 %v220_v13  ;;  %476 = vmatpush.msra.mxu2 %v207_v14  ;;  %v562_v13 = vld [vmem:[%s1713_s3 + $0x168] sm:$0xff]  ;;  %v528_v14 = vld [vmem:[%s1713_s3 + $0x58] sm:$0xff] }
  0x52   :  { %437 = vmatpush.msra.mxu0 %v193_v15  ;;  %456 = vmatpush.msra.mxu1 %v206_v16  ;;  %v545_v15 = vld [vmem:[%s1713_s3 + $0xe0] sm:$0xff]  ;;  %v578_v16 = vld [vmem:[%s1713_s3 + $0x1e8] sm:$0xff] }
  0x53   :  { %496 = vmatpush.msra.mxu3 %v208_v17  ;;  %477 = vmatpush.msra.mxu2 %v195_v18  ;;  %v561_v17 = vld [vmem:[%s1713_s3 + $0x160] sm:$0xff]  ;;  %v527_v18 = vld [vmem:[%s1713_s3 + $0x50] sm:$0xff] }
  0x54   :  { %438 = vmatpush.msra.mxu0 %v181_v19  ;;  %457 = vmatpush.msra.mxu1 %v194_v20  ;;  %v544_v19 = vld [vmem:[%s1713_s3 + $0xd8] sm:$0xff]  ;;  %v577_v20 = vld [vmem:[%s1713_s3 + $0x1e0] sm:$0xff] }
  0x55   :  { %497 = vmatpush.msra.mxu3 %v196_v21  ;;  %478 = vmatpush.msra.mxu2 %v183_v22  ;;  %v560_v21 = vld [vmem:[%s1713_s3 + $0x158] sm:$0xff]  ;;  %v526_v22 = vld [vmem:[%s1713_s3 + $0x48] sm:$0xff] }
  0x56   :  { %439 = vmatpush.msra.mxu0 %v169_v23  ;;  %458 = vmatpush.msra.mxu1 %v182_v24  ;;  %v543_v23 = vld [vmem:[%s1713_s3 + $0xd0] sm:$0xff]  ;;  %v576_v24 = vld [vmem:[%s1713_s3 + $0x1d8] sm:$0xff] }
  0x57   :  { %498 = vmatpush.msra.mxu3 %v184_v25  ;;  %479 = vmatpush.msra.mxu2 %v171_v26  ;;  %v559_v25 = vld [vmem:[%s1713_s3 + $0x150] sm:$0xff]  ;;  %v525_v26 = vld [vmem:[%s1713_s3 + $0x40] sm:$0xff] }
  0x58   :  { %440 = vmatpush.msra.mxu0 %v157_v27  ;;  %459 = vmatpush.msra.mxu1 %v170_v28  ;;  %v542_v27 = vld [vmem:[%s1713_s3 + $0xc8] sm:$0xff]  ;;  %v575_v28 = vld [vmem:[%s1713_s3 + $0x1d0] sm:$0xff] }
  0x59   :  { %499 = vmatpush.msra.mxu3 %v172_v29  ;;  %480 = vmatpush.msra.mxu2 %v159_v30  ;;  %v524_v29 = vld [vmem:[%s1713_s3 + $0x38] sm:$0xff]  ;;  %v541_v30 = vld [vmem:[%s1713_s3 + $0xc0] sm:$0xff] }
  0x5a   :  { %441 = vmatpush.msra.mxu0 %v145_v31  ;;  %460 = vmatpush.msra.mxu1 %v158_v32  ;;  %v523_v31 = vld [vmem:[%s1713_s3 + $0x30] sm:$0xff]  ;;  %v540_v32 = vld [vmem:[%s1713_s3 + $0xb8] sm:$0xff] }
  0x5b   :  { %500 = vmatpush.msra.mxu3 %v160_v33  ;;  %481 = vmatpush.msra.mxu2 %v147_v34  ;;  %v558_v33 = vld [vmem:[%s1713_s3 + $0x148] sm:$0xff] }
  0x5c   :  { %442 = vmatpush.msra.mxu0 %v133_v35  ;;  %461 = vmatpush.msra.mxu1 %v146_v36  ;;  %v574_v34 = vld [vmem:[%s1713_s3 + $0x1c8] sm:$0xff]  ;;  %v539_v35 = vld [vmem:[%s1713_s3 + $0xb0] sm:$0xff]  ;;  %v557_v36 = vld [vmem:[%s1713_s3 + $0x140] sm:$0xff] }
  0x5d   :  { %501 = vmatpush.msra.mxu3 %v148_v37  ;;  %482 = vmatpush.msra.mxu2 %v135_v38  ;;  %v573_v37 = vld [vmem:[%s1713_s3 + $0x1c0] sm:$0xff] }
  0x5e   :  { %443 = vmatpush.msra.mxu0 %v121_v39  ;;  %462 = vmatpush.msra.mxu1 %v134_v40  ;;  %v521_v38 = vld [vmem:[%s1713_s3 + $0x20] sm:$0xff]  ;;  %v538_v39 = vld [vmem:[%s1713_s3 + $0xa8] sm:$0xff]  ;;  %v556_v40 = vld [vmem:[%s1713_s3 + $0x138] sm:$0xff] }
  0x5f   :  { %502 = vmatpush.msra.mxu3 %v136_v41  ;;  %483 = vmatpush.msra.mxu2 %v123_v42  ;;  %v572_v41 = vld [vmem:[%s1713_s3 + $0x1b8] sm:$0xff] }
  0x60   :  { %444 = vmatpush.msra.mxu0 %v109_v43  ;;  %463 = vmatpush.msra.mxu1 %v122_v44  ;;  %v520_v42 = vld [vmem:[%s1713_s3 + $0x18] sm:$0xff]  ;;  %v537_v43 = vld [vmem:[%s1713_s3 + $0xa0] sm:$0xff]  ;;  %v555_v44 = vld [vmem:[%s1713_s3 + $0x130] sm:$0xff] }
  0x61   :  { %503 = vmatpush.msra.mxu3 %v124_v45  ;;  %484 = vmatpush.msra.mxu2 %v111_v46  ;;  %v571_v45 = vld [vmem:[%s1713_s3 + $0x1b0] sm:$0xff] }
  0x62   :  { %445 = vmatpush.msra.mxu0 %v97_v48  ;;  %464 = vmatpush.msra.mxu1 %v110_v49  ;;  %v519_v46 = vld [vmem:[%s1713_s3 + $0x10] sm:$0xff]  ;;  %v536_v48 = vld [vmem:[%s1713_s3 + $0x98] sm:$0xff]  ;;  %v554_v49 = vld [vmem:[%s1713_s3 + $0x128] sm:$0xff] }
  0x63   :  { %504 = vmatpush.msra.mxu3 %v112_v50  ;;  %485 = vmatpush.msra.mxu2 %v99_v51  ;;  %v570_v50 = vld [vmem:[%s1713_s3 + $0x1a8] sm:$0xff] }
  0x64   :  { %446 = vmatpush.msra.mxu0 %v85_v52  ;;  %465 = vmatpush.msra.mxu1 %v98_v53  ;;  %v518_v51 = vld [vmem:[%s1713_s3 + $0x8] sm:$0xff]  ;;  %v535_v52 = vld [vmem:[%s1713_s3 + $0x90] sm:$0xff]  ;;  %v553_v53 = vld [vmem:[%s1713_s3 + $0x120] sm:$0xff] }
  0x65   :  { %505 = vmatpush.msra.mxu3 %v100_v54  ;;  %486 = vmatpush.msra.mxu2 %v87_v55  ;;  %v569_v54 = vld [vmem:[%s1713_s3 + $0x1a0] sm:$0xff] }
  0x66   :  { %447 = vmatpush.msra.mxu0 %v73_v56  ;;  %466 = vmatpush.msra.mxu1 %v86_v57  ;;  %v517_v55 = vld [vmem:[%s1713_s3] sm:$0xff]  ;;  %v534_v56 = vld [vmem:[%s1713_s3 + $0x88] sm:$0xff]  ;;  %v552_v57 = vld [vmem:[%s1713_s3 + $0x118] sm:$0xff] }
  0x67   :  { %506 = vmatpush.msra.mxu3 %v88_v58  ;;  %487 = vmatpush.msra.mxu2 %v75_v59  ;;  %v568_v58 = vld [vmem:[%s1713_s3 + $0x198] sm:$0xff]  ;;  %v533_v59 = vld [vmem:[%s1713_s3 + $0x80] sm:$0xff] }
  0x68   :  { %448 = vmatpush.msra.mxu0 %v61_v60  ;;  %467 = vmatpush.msra.mxu1 %v74_v61  ;;  %v551_v60 = vld [vmem:[%s1713_s3 + $0x110] sm:$0xff] }
  0x69   :  { %507 = vmatpush.msra.mxu3 %v76_v63  ;;  %488 = vmatpush.msra.mxu2 %v63_v1  ;;  %v567_v61 = vld [vmem:[%s1713_s3 + $0x190] sm:$0xff]  ;;  %v566_v63 = vld [vmem:[%s1713_s3 + $0x188] sm:$0xff]  ;;  %v565_v1 = vld [vmem:[%s1713_s3 + $0x180] sm:$0xff] }
  0x6a   :  { %585 = vmatpush.msrb.mxu0 %v532_v62  ;;  %468 = vmatpush.msra.mxu1 %v62_v0  ;;  %v550_v62 = vld [vmem:[%s1713_s3 + $0x108] sm:$0xff]  ;;  %v549_v0 = vld [vmem:[%s1713_s3 + $0x100] sm:$0xff] }
  0x6b   :  { %508 = vmatpush.msra.mxu3 %v64_v4  ;;  %625 = vmatpush.msrb.mxu2 %v564_v5 }
  0x6c   :  { %586 = vmatpush.msrb.mxu0 %v531_v2  ;;  %605 = vmatpush.msrb.mxu1 %v548_v3  ;;  %v245_v3 = vld [vmem:[%s1712_s2] sm:$0xff] }
  0x6d   :  { %645 = vmatpush.msrb.mxu3 %v580_v8  ;;  %626 = vmatpush.msrb.mxu2 %v563_v9  ;;  %v249_v5 = vperm.slane %v245_v3, 0  ;;  %v253_v8 = vperm.slane %v245_v3, 4  ;;  %v250_v9 = vperm.slane %v245_v3, 1 }
  0x6e   :  { %587 = vmatpush.msrb.mxu0 %v530_v6  ;;  %606 = vmatpush.msrb.mxu1 %v547_v7 }
  0x6f   :  { %646 = vmatpush.msrb.mxu3 %v579_v12  ;;  %627 = vmatpush.msrb.mxu2 %v562_v13  ;;  %v254_v12 = vperm.slane %v245_v3, 5 }
  0x70   :  { %588 = vmatpush.msrb.mxu0 %v529_v10  ;;  %607 = vmatpush.msrb.mxu1 %v546_v11 }
  0x71   :  { %647 = vmatpush.msrb.mxu3 %v578_v16  ;;  %628 = vmatpush.msrb.mxu2 %v561_v17 }
  0x72   :  { %589 = vmatpush.msrb.mxu0 %v528_v14  ;;  %608 = vmatpush.msrb.mxu1 %v545_v15  ;;  %v251_v15 = vperm.slane %v245_v3, 2 }
  0x73   :  { %648 = vmatpush.msrb.mxu3 %v577_v20  ;;  %629 = vmatpush.msrb.mxu2 %v560_v21  ;;  %v255_v20 = vperm.slane %v245_v3, 6  ;;  %v256_v21 = vperm.slane %v245_v3, 7 }
  0x74   :  { %590 = vmatpush.msrb.mxu0 %v527_v18  ;;  %609 = vmatpush.msrb.mxu1 %v544_v19  ;;  %v252_v18 = vperm.slane %v245_v3, 3  ;;  %v751_v3 = vld [vmem:[%s1717_s7 + $0xa0] sm:$0xff] }
  0x75   :  { %649 = vmatpush.msrb.mxu3 %v576_v24  ;;  %630 = vmatpush.msrb.mxu2 %v559_v25 }
  0x76   :  { %591 = vmatpush.msrb.mxu0 %v526_v22  ;;  %610 = vmatpush.msrb.mxu1 %v543_v23 }
  0x77   :  { %650 = vmatpush.msrb.mxu3 %v575_v28  ;;  %449 = vmatmul.f32.vlgmr.msra.gmra.mxu0 %v1149_v47 }
  0x78   :  { %592 = vmatpush.msrb.mxu0 %v525_v26  ;;  %611 = vmatpush.msrb.mxu1 %v542_v27 }
  0x79   :  { %469 = vmatmul.f32.vlgmr.msra.gmra.mxu1 %v1149_v47  ;;  %489 = vmatmul.f32.vlgmr.msra.gmra.mxu2 %v1149_v47 }
  0x7a   :  { %593 = vmatpush.msrb.mxu0 %v524_v29  ;;  %612 = vmatpush.msrb.mxu1 %v541_v30 }
  0x7b   :  { %509 = vmatmul.f32.vlgmr.msra.gmra.mxu3 %v1149_v47  ;;  %631 = vmatpush.msrb.mxu2 %v558_v33  ;;  %v522_v47 = vld [vmem:[%s1713_s3 + $0x28] sm:$0xff] }
  0x7c   :  { %594 = vmatpush.msrb.mxu0 %v523_v31  ;;  %613 = vmatpush.msrb.mxu1 %v540_v32  ;;  %v679_v31 = vld [vmem:[%s1715_s5 + $0x38] sm:$0xff]  ;;  %v678_v32 = vld [vmem:[%s1715_s5 + $0x30] sm:$0xff] }
  0x7d   :  { %651 = vmatpush.msrb.mxu3 %v574_v34  ;;  %632 = vmatpush.msrb.mxu2 %v557_v36 }
  0x7e   :  { %595 = vmatpush.msrb.mxu0 %v522_v47  ;;  %614 = vmatpush.msrb.mxu1 %v539_v35  ;;  %v1026_v35 = vld [vmem:[%s1714_s4] ss:$0 sm:$0xff] }
  0x7f   :  { %652 = vmatpush.msrb.mxu3 %v573_v37  ;;  %633 = vmatpush.msrb.mxu2 %v556_v40 }
  0x80   :  { %596 = vmatpush.msrb.mxu0 %v521_v38  ;;  %615 = vmatpush.msrb.mxu1 %v538_v39 }
  0x81   :  { %653 = vmatpush.msrb.mxu3 %v572_v41  ;;  %634 = vmatpush.msrb.mxu2 %v555_v44 }
  0x82   :  { %597 = vmatpush.msrb.mxu0 %v520_v42  ;;  %616 = vmatpush.msrb.mxu1 %v537_v43 }
  0x83   :  { %654 = vmatpush.msrb.mxu3 %v571_v45  ;;  %635 = vmatpush.msrb.mxu2 %v554_v49  ;;  %v675_v49 = vld [vmem:[%s1715_s5 + $0x18] sm:$0xff] }
  0x84   :  { %598 = vmatpush.msrb.mxu0 %v519_v46  ;;  %617 = vmatpush.msrb.mxu1 %v536_v48  ;;  %v677_v46 = vld [vmem:[%s1715_s5 + $0x28] sm:$0xff]  ;;  %v676_v48 = vld [vmem:[%s1715_s5 + $0x20] sm:$0xff] }
  0x85   :  { %655 = vmatpush.msrb.mxu3 %v570_v50  ;;  %636 = vmatpush.msrb.mxu2 %v553_v53  ;;  %v674_v50 = vld [vmem:[%s1715_s5 + $0x10] sm:$0xff] }
  0x86   :  { %599 = vmatpush.msrb.mxu0 %v518_v51  ;;  %618 = vmatpush.msrb.mxu1 %v535_v52  ;;  %v673_v51 = vld [vmem:[%s1715_s5 + $0x8] sm:$0xff]  ;;  %v672_v52 = vld [vmem:[%s1715_s5] sm:$0xff] }
  0x87   :  { %656 = vmatpush.msrb.mxu3 %v569_v54  ;;  %637 = vmatpush.msrb.mxu2 %v552_v57  ;;  %v705_v57 = vld [vmem:[%s1716_s6 + $0x8] sm:$0xff] }
  0x88   :  { %600 = vmatpush.msrb.mxu0 %v517_v55  ;;  %619 = vmatpush.msrb.mxu1 %v534_v56 }
  0x89   :  { %657 = vmatpush.msrb.mxu3 %v568_v58  ;;  %638 = vmatpush.msrb.mxu2 %v551_v60  ;;  %v704_v58 = vld [vmem:[%s1716_s6] sm:$0xff]  ;;  %v760_v60 = vld [vmem:[%s1717_s7 + $0xe8] sm:$0xff]  ;;  %s1004_s6 = sshll.u32 %s1087_s21, 4  ;;  %s1005_s6 = int_to_ptr.vmem [resolvable:$true] %s1004_s6 }
  0x8a   :  { %620 = vmatpush.msrb.mxu1 %v533_v59  ;;  %691 = vmatpush.msra.mxu0 %v679_v31  ;;  %v759_v59 = vld [vmem:[%s1717_s7 + $0xe0] sm:$0xff]  ;;  %v896_v31 = vld [vmem:[%s1718_s8 + $0x170] sm:$0xff] }
  0x8b   :  { %658 = vmatpush.msrb.mxu3 %v567_v61  ;;  %639 = vmatpush.msrb.mxu2 %v550_v62  ;;  %v761_v61 = vld [vmem:[%s1717_s7 + $0xf0] sm:$0xff]  ;;  %v762_v62 = vld [vmem:[%s1717_s7 + $0xf8] sm:$0xff] }
  0x8c   :  { %692 = vmatpush.msra.mxu0 %v678_v32  ;;  %724 = vmatpush.msra.mxu1 %v705_v57  ;;  %v912_v32 = vld [vmem:[%s1718_s8 + $0x1f0] sm:$0xff]  ;;  %v907_v57 = vld [vmem:[%s1718_s8 + $0x1c8] sm:$0xff] }
  0x8d   :  { %659 = vmatpush.msrb.mxu3 %v566_v63  ;;  %640 = vmatpush.msrb.mxu2 %v549_v0  ;;  %v755_v63 = vld [vmem:[%s1717_s7 + $0xc0] sm:$0xff]  ;;  %v756_v0 = vld [vmem:[%s1717_s7 + $0xc8] sm:$0xff] }
  0x8e   :  { %693 = vmatpush.msra.mxu0 %v677_v46  ;;  %725 = vmatpush.msra.mxu1 %v704_v58  ;;  %v893_v46 = vld [vmem:[%s1718_s8 + $0x158] sm:$0xff]  ;;  %v860_v58 = vld [vmem:[%s1718_s8 + $0x50] sm:$0xff] }
  0x8f   :  { %660 = vmatpush.msrb.mxu3 %v565_v1  ;;  %774 = vmatpush.msra.mxu2 %v759_v59  ;;  %v757_v1 = vld [vmem:[%s1717_s7 + $0xd0] sm:$0xff] }
  0x90   :  { %694 = vmatpush.msra.mxu0 %v676_v48  ;;  %v909_v48 = vld [vmem:[%s1718_s8 + $0x1d8] sm:$0xff]  ;;  %v876_v59 = vld [vmem:[%s1718_s8 + $0xd0] sm:$0xff] }
  0x91   :  { %794 = vmatpush.msra.mxu3 %v760_v60  ;;  %775 = vmatpush.msra.mxu2 %v755_v63  ;;  %v890_v60 = vld [vmem:[%s1718_s8 + $0x140] sm:$0xff]  ;;  %v875_v63 = vld [vmem:[%s1718_s8 + $0xc8] sm:$0xff] }
  0x92   :  { %695 = vmatpush.msra.mxu0 %v675_v49  ;;  %v862_v49 = vld [vmem:[%s1718_s8 + $0x60] sm:$0xff] }
  0x93   :  { %795 = vmatpush.msra.mxu3 %v756_v0  ;;  %776 = vmatpush.msra.mxu2 %v751_v3  ;;  %v889_v0 = vld [vmem:[%s1718_s8 + $0x138] sm:$0xff]  ;;  %v874_v3 = vld [vmem:[%s1718_s8 + $0xc0] sm:$0xff] }
  0x94   :  { %696 = vmatpush.msra.mxu0 %v674_v50  ;;  %v878_v50 = vld [vmem:[%s1718_s8 + $0xe0] sm:$0xff] }
  0x96   :  { %697 = vmatpush.msra.mxu0 %v673_v51  ;;  %v892_v51 = vld [vmem:[%s1718_s8 + $0x150] sm:$0xff] }
  0x98   :  { %698 = vmatpush.msra.mxu0 %v672_v52  ;;  %v908_v52 = vld [vmem:[%s1718_s8 + $0x1d0] sm:$0xff] }
  0xbb   :  { %v290_v2 = vpop.f32.mrf.mxu0 }
  0xbc   :  { %v291_v10 = vadd.f32 %v290_v2, %v249_v5  ;;  %v758_v2 = vld [vmem:[%s1717_s7 + $0xd8] sm:$0xff]  ;;  %v753_v5 = vld [vmem:[%s1717_s7 + $0xb0] sm:$0xff] }
  0xbf   :  { %v310_v4 = vpop.f32.mrf.mxu1 }
  0xc0   :  { %v311_v14 = vadd.f32 %v310_v4, %v250_v9  ;;  %v752_v4 = vld [vmem:[%s1717_s7 + $0xa8] sm:$0xff]  ;;  %v749_v9 = vld [vmem:[%s1717_s7 + $0x90] sm:$0xff] }
  0xc1   :  { %796 = vmatpush.msra.mxu3 %v752_v4  ;;  %v888_v4 = vld [vmem:[%s1718_s8 + $0x130] sm:$0xff] }
  0xc2   :  { %v330_v6 = vpop.f32.mrf.mxu2  ;;  %v350_v7 = vpop.f32.mrf.mxu3 }
  0xc3   :  { %v331_v25 = vadd.f32 %v330_v6, %v251_v15  ;;  %v351_v26 = vadd.f32 %v350_v7, %v252_v18  ;;  %v754_v6 = vld [vmem:[%s1717_s7 + $0xb8] sm:$0xff]  ;;  %v747_v7 = vld [vmem:[%s1717_s7 + $0x80] sm:$0xff] }
  0xc4   :  { %777 = vmatpush.msra.mxu2 %v747_v7  ;;  %v739_v15 = vld [vmem:[%s1717_s7 + $0x40] sm:$0xff]  ;;  %v742_v18 = vld [vmem:[%s1717_s7 + $0x58] sm:$0xff] }
  0xc5   :  { %v370_v11 = vpop.f32.mrf.mxu0  ;;  %v873_v7 = vld [vmem:[%s1718_s8 + $0xb8] sm:$0xff] }
  0xc6   :  { %v371_v13 = vadd.f32 %v370_v11, %v253_v8  ;;  %v748_v8 = vld [vmem:[%s1717_s7 + $0x88] sm:$0xff]  ;;  %v743_v11 = vld [vmem:[%s1717_s7 + $0x60] sm:$0xff] }
  0xc7   :  { %797 = vmatpush.msra.mxu3 %v748_v8  ;;  %778 = vmatpush.msra.mxu2 %v743_v11  ;;  %v887_v8 = vld [vmem:[%s1718_s8 + $0x128] sm:$0xff]  ;;  %v872_v11 = vld [vmem:[%s1718_s8 + $0xb0] sm:$0xff] }
  0xc8   :  { %v513_v16 = vmul.f32 %v371_v13, %v291_v10  ;;  %v390_v17 = vpop.f32.mrf.mxu1  ;;  %v750_v10 = vld [vmem:[%s1717_s7 + $0x98] sm:$0xff]  ;;  %v745_v13 = vld [vmem:[%s1717_s7 + $0x70] sm:$0xff] }
  0xc9   :  { %v391_v19 = vadd.f32 %v390_v17, %v254_v12  ;;  %v744_v12 = vld [vmem:[%s1717_s7 + $0x68] sm:$0xff]  ;;  %v741_v17 = vld [vmem:[%s1717_s7 + $0x50] sm:$0xff]  ;;  %779 = vmatpush.msra.mxu2 %v739_v15 }
  0xca   :  { %601 = vmatmul.f32.vlgmr.msrb.gmra.mxu0 %v513_v16  ;;  %v740_v16 = vld [vmem:[%s1717_s7 + $0x48] sm:$0xff]  ;;  %798 = vmatpush.msra.mxu3 %v744_v12  ;;  %v886_v12 = vld [vmem:[%s1718_s8 + $0x120] sm:$0xff] }
  0xcb   :  { %v514_v22 = vmul.f32 %v391_v19, %v311_v14  ;;  %834 = vmatpush.msrb.mxu0 %v762_v62  ;;  %v746_v14 = vld [vmem:[%s1717_s7 + $0x78] sm:$0xff]  ;;  %v859_v62 = vld [vmem:[%s1718_s8 + $0x48] sm:$0xff] }
  0xcc   :  { %v410_v23 = vpop.f32.mrf.mxu2  ;;  %v430_v24 = vpop.f32.mrf.mxu3  ;;  %799 = vmatpush.msra.mxu3 %v740_v16  ;;  %v871_v15 = vld [vmem:[%s1718_s8 + $0xa8] sm:$0xff]  ;;  %v885_v16 = vld [vmem:[%s1718_s8 + $0x118] sm:$0xff] }
  0xcd   :  { %v411_v27 = vadd.f32 %v410_v23, %v255_v20  ;;  %v431_v28 = vadd.f32 %v430_v24, %v256_v21  ;;  %621 = vmatmul.f32.vlgmr.msrb.gmra.mxu1 %v514_v22  ;;  %835 = vmatpush.msrb.mxu0 %v758_v2  ;;  %v735_v21 = vld [vmem:[%s1717_s7 + $0x20] sm:$0xff]  ;;  %v736_v22 = vld [vmem:[%s1717_s7 + $0x28] sm:$0xff]  ;;  %v737_v23 = vld [vmem:[%s1717_s7 + $0x30] sm:$0xff] }
  0xce   :  { %814 = vmatpush.msrb.mxu1 %v761_v61  ;;  %780 = vmatpush.msra.mxu2 %v735_v21  ;;  %v738_v24 = vld [vmem:[%s1717_s7 + $0x38] sm:$0xff]  ;;  %v906_v61 = vld [vmem:[%s1718_s8 + $0x1c0] sm:$0xff] }
  0xcf   :  { %v515_v29 = vmul.f32 %v411_v27, %v331_v25  ;;  %v516_v30 = vmul.f32 %v431_v28, %v351_v26  ;;  %836 = vmatpush.msrb.mxu0 %v754_v6  ;;  %800 = vmatpush.msra.mxu3 %v736_v22  ;;  %v731_v25 = vld [vmem:[%s1717_s7] sm:$0xff]  ;;  %v732_v26 = vld [vmem:[%s1717_s7 + $0x8] sm:$0xff]  ;;  %v733_v27 = vld [vmem:[%s1717_s7 + $0x10] sm:$0xff] }
  0xd0   :  { %815 = vmatpush.msrb.mxu1 %v757_v1  ;;  %781 = vmatpush.msra.mxu2 %v731_v25  ;;  %v734_v28 = vld [vmem:[%s1717_s7 + $0x18] sm:$0xff]  ;;  %v858_v2 = vld [vmem:[%s1718_s8 + $0x40] sm:$0xff] }
  0xd1   :  { %641 = vmatmul.f32.vlgmr.msrb.gmra.mxu2 %v515_v29  ;;  %661 = vmatmul.f32.vlgmr.msrb.gmra.mxu3 %v516_v30  ;;  %v897_v29 = vld [vmem:[%s1718_s8 + $0x178] sm:$0xff]  ;;  %v854_v22 = vld [vmem:[%s1718_s8 + $0x20] sm:$0xff] }
  0xd2   :  { %816 = vmatpush.msrb.mxu1 %v753_v5  ;;  %837 = vmatpush.msrb.mxu0 %v750_v10  ;;  %v913_v30 = vld [vmem:[%s1718_s8 + $0x1f8] sm:$0xff]  ;;  %v904_v5 = vld [vmem:[%s1718_s8 + $0x1b0] sm:$0xff] }
  0xd3   :  { %801 = vmatpush.msra.mxu3 %v732_v26  ;;  %v905_v1 = vld [vmem:[%s1718_s8 + $0x1b8] sm:$0xff]  ;;  %v856_v10 = vld [vmem:[%s1718_s8 + $0x30] sm:$0xff] }
  0xd4   :  { %817 = vmatpush.msrb.mxu1 %v749_v9  ;;  %838 = vmatpush.msrb.mxu0 %v746_v14  ;;  %v857_v6 = vld [vmem:[%s1718_s8 + $0x38] sm:$0xff]  ;;  %v903_v9 = vld [vmem:[%s1718_s8 + $0x1a8] sm:$0xff] }
  0xd5   :  { %v855_v14 = vld [vmem:[%s1718_s8 + $0x28] sm:$0xff]  ;;  %v853_v25 = vld [vmem:[%s1718_s8 + $0x18] sm:$0xff] }
  0xd6   :  { %818 = vmatpush.msrb.mxu1 %v745_v13  ;;  %839 = vmatpush.msrb.mxu0 %v742_v18  ;;  %v902_v13 = vld [vmem:[%s1718_s8 + $0x1a0] sm:$0xff]  ;;  %v884_v18 = vld [vmem:[%s1718_s8 + $0x110] sm:$0xff]  ;;  %v869_v26 = vld [vmem:[%s1718_s8 + $0x98] sm:$0xff] }
  0xd8   :  { %819 = vmatpush.msrb.mxu1 %v741_v17  ;;  %840 = vmatpush.msrb.mxu0 %v738_v24  ;;  %v901_v17 = vld [vmem:[%s1718_s8 + $0x198] sm:$0xff]  ;;  %v899_v24 = vld [vmem:[%s1718_s8 + $0x188] sm:$0xff] }
  0xda   :  { %820 = vmatpush.msrb.mxu1 %v737_v23  ;;  %841 = vmatpush.msrb.mxu0 %v734_v28  ;;  %v870_v23 = vld [vmem:[%s1718_s8 + $0xa0] sm:$0xff] }
  0xdb   :  { %v898_v28 = vld [vmem:[%s1718_s8 + $0x180] sm:$0xff] }
  0xdc   :  { %821 = vmatpush.msrb.mxu1 %v733_v27  ;;  %v882_v27 = vld [vmem:[%s1718_s8 + $0x100] sm:$0xff] }
  0xf4   :  { %v1364_v33 = vpop.f32.mrf.mxu0 }
  0xf6   :  { %v1366_v34 = vpop.f32.mrf.mxu1 }
  0xfc   :  { %v1368_v47 = vpop.f32.mrf.mxu2 }
  0xfe   :  { %v1373_v37 = vpop.f32.mrf.mxu3 }
 0x147   :  { %v602_v36 = vpop.f32.mrf.mxu0 }
 0x148   :  { %v603_v38 = vadd.f32 %v1026_v35, %v602_v36  ;;  %v895_v35 = vld [vmem:[%s1718_s8 + $0x168] sm:$0xff] }
 0x149   :  { %v911_v36 = vld [vmem:[%s1718_s8 + $0x1e8] sm:$0xff] }
 0x14a   :  { %v622_v39 = vpop.f32.mrf.mxu1 }
 0x14b   :  { %v623_v40 = vadd.f32 %v622_v39, %v603_v38  ;;  %v865_v38 = vld [vmem:[%s1718_s8 + $0x78] sm:$0xff] }
 0x14c   :  { %v881_v39 = vld [vmem:[%s1718_s8 + $0xf8] sm:$0xff]  ;;  %918 = vmatpush.msrb.mxu2 %v865_v38  ;;  %v246_v38 = vld [vmem:[%s1712_s2 + $0x8] sm:$0xf] }
 0x14d   :  { %938 = vmatpush.msrb.mxu3 %v881_v39  ;;  %v259_v39 = vperm.slane %v246_v38, 2 }
 0x154   :  { %v642_v41 = vpop.f32.mrf.mxu2  ;;  %v662_v43 = vpop.f32.mrf.mxu3 }
 0x155   :  { %v643_v42 = vadd.f32 %v642_v41, %v623_v40  ;;  %v864_v40 = vld [vmem:[%s1718_s8 + $0x70] sm:$0xff] }
 0x156   :  { %v880_v41 = vld [vmem:[%s1718_s8 + $0xf0] sm:$0xff]  ;;  %919 = vmatpush.msrb.mxu2 %v864_v40  ;;  %v260_v40 = vperm.slane %v246_v38, 3 }
 0x157   :  { %v663_v44 = vadd.f32 %v662_v43, %v643_v42  ;;  %v894_v42 = vld [vmem:[%s1718_s8 + $0x160] sm:$0xff]  ;;  %939 = vmatpush.msrb.mxu3 %v880_v41  ;;  %v491_v41 = vadd.f32 %v1368_v47, %v259_v39 }
 0x158   :  { %v910_v43 = vld [vmem:[%s1718_s8 + $0x1e0] sm:$0xff] }
 0x159   :  { %v666_v45 = vsel %vm665_vm0, %v663_v44, -inf  ;;  %v1027_v47 = vld [vmem:[%s1719_s9] ss:$0 sm:$0xff] }
 0x15a   :  { %667 = vmax.xlane.f32.xlu0 %v666_v45  ;;  %v879_v45 = vld [vmem:[%s1718_s8 + $0xe8] sm:$0xff] }
 0x15b   :  { %940 = vmatpush.msrb.mxu3 %v879_v45 }
 0x15d   :  { %941 = vmatpush.msrb.mxu3 %v878_v50 }
 0x1cd   :  { %v668_v53 = vpop.xlane.xlu0 %667 }
 0x1ce   :  { %v669_v54 = vsub.f32 %v663_v44, %v668_v53  ;;  %v863_v44 = vld [vmem:[%s1718_s8 + $0x68] sm:$0xff]  ;;  %v861_v53 = vld [vmem:[%s1718_s8 + $0x58] sm:$0xff] }
 0x1cf   :  { %920 = vmatpush.msrb.mxu2 %v863_v44  ;;  %v258_v44 = vperm.slane %v246_v38, 1 }
 0x1d0   :  { %v670_v55 = vmul.f32 1.442695, %v669_v54  ;;  %v877_v54 = vld [vmem:[%s1718_s8 + $0xd8] sm:$0xff] }
 0x1d1   :  { %921 = vmatpush.msrb.mxu2 %v862_v49  ;;  %942 = vmatpush.msrb.mxu3 %v877_v54 }
 0x1d2   :  { %1028 = vpow2.f32 %v670_v55  ;;  %v891_v55 = vld [vmem:[%s1718_s8 + $0x148] sm:$0xff] }
 0x1d3   :  { %922 = vmatpush.msrb.mxu2 %v861_v53  ;;  %943 = vmatpush.msrb.mxu3 %v876_v59 }
 0x1d5   :  { %923 = vmatpush.msrb.mxu2 %v860_v58  ;;  %944 = vmatpush.msrb.mxu3 %v875_v63 }
 0x1d7   :  { %924 = vmatpush.msrb.mxu2 %v859_v62  ;;  %945 = vmatpush.msrb.mxu3 %v874_v3 }
 0x1d8   :  { %v1394_v56 = vpop.eup %1028 }
 0x1d9   :  { %1016 = vmatmul.msk.f32.vlgmr.msra.gmra.mxu0 %vm665_vm0, %v1394_v56  ;;  %925 = vmatpush.msrb.mxu2 %v858_v2 }
 0x1da   :  { %978 = vmatpush.msra.mxu0 %v913_v30  ;;  %946 = vmatpush.msrb.mxu3 %v873_v7  ;;  %v868_v30 = vld [vmem:[%s1718_s8 + $0x90] sm:$0xff] }
 0x1db   :  { %926 = vmatpush.msrb.mxu2 %v857_v6 }
 0x1dc   :  { %979 = vmatpush.msra.mxu0 %v912_v32  ;;  %947 = vmatpush.msrb.mxu3 %v872_v11  ;;  %v867_v32 = vld [vmem:[%s1718_s8 + $0x88] sm:$0xff] }
 0x1dd   :  { %927 = vmatpush.msrb.mxu2 %v856_v10 }
 0x1de   :  { %980 = vmatpush.msra.mxu0 %v911_v36  ;;  %948 = vmatpush.msrb.mxu3 %v871_v15  ;;  %v866_v36 = vld [vmem:[%s1718_s8 + $0x80] sm:$0xff] }
 0x1df   :  { %928 = vmatpush.msrb.mxu2 %v855_v14 }
 0x1e0   :  { %981 = vmatpush.msra.mxu0 %v910_v43  ;;  %949 = vmatpush.msrb.mxu3 %v870_v23  ;;  %v257_v43 = vperm.slane %v246_v38, 0 }
 0x1e1   :  { %929 = vmatpush.msrb.mxu2 %v854_v22 }
 0x1e2   :  { %982 = vmatpush.msra.mxu0 %v909_v48  ;;  %950 = vmatpush.msrb.mxu3 %v869_v26  ;;  %v451_v50 = vadd.f32 %v1364_v33, %v257_v43 }
 0x1e3   :  { %930 = vmatpush.msrb.mxu2 %v853_v25 }
 0x1e4   :  { %983 = vmatpush.msra.mxu0 %v908_v52  ;;  %951 = vmatpush.msrb.mxu3 %v868_v30 }
 0x1e6   :  { %984 = vmatpush.msra.mxu0 %v907_v57  ;;  %952 = vmatpush.msrb.mxu3 %v867_v32 }
 0x1e8   :  { %985 = vmatpush.msra.mxu0 %v906_v61  ;;  %953 = vmatpush.msrb.mxu3 %v866_v36 }
 0x1ea   :  { %986 = vmatpush.msra.mxu0 %v905_v1 }
 0x1ec   :  { %987 = vmatpush.msra.mxu0 %v904_v5 }
 0x1ee   :  { %988 = vmatpush.msra.mxu0 %v903_v9 }
 0x1f0   :  { %989 = vmatpush.msra.mxu0 %v902_v13 }
 0x1f2   :  { %990 = vmatpush.msra.mxu0 %v901_v17 }
 0x256   :  { %v700_v19 = vpop.f32.mrf.mxu0 }
 0x257   :  { %1030 = vrcp.f32 %v700_v19  ;;  %v900_v19 = vld [vmem:[%s1718_s8 + $0x190] sm:$0xff] }
 0x258   :  { %991 = vmatpush.msra.mxu0 %v900_v19 }
 0x25a   :  { %992 = vmatpush.msra.mxu0 %v899_v24 }
 0x25c   :  { %993 = vmatpush.msra.mxu0 %v898_v28 }
 0x25d   :  { %v1031_v20 = vpop.eup %1030 }
 0x25e   :  { %1017 = vmatmul.msk.f32.vlgmr.msra.gmra.mxu1 %vm706_vm1, %v1031_v20 }
 0x25f   :  { %958 = vmatpush.msra.mxu1 %v897_v29  ;;  %v852_v29 = vld [vmem:[%s1718_s8 + $0x10] sm:$0xff] }
 0x260   :  { %931 = vmatpush.msrb.mxu2 %v852_v29 }
 0x261   :  { %959 = vmatpush.msra.mxu1 %v896_v31  ;;  %v851_v31 = vld [vmem:[%s1718_s8 + $0x8] sm:$0xff] }
 0x262   :  { %932 = vmatpush.msrb.mxu2 %v851_v31 }
 0x263   :  { %960 = vmatpush.msra.mxu1 %v895_v35  ;;  %v850_v35 = vld [vmem:[%s1718_s8] sm:$0xff] }
 0x264   :  { %933 = vmatpush.msrb.mxu2 %v850_v35 }
 0x265   :  { %961 = vmatpush.msra.mxu1 %v894_v42  ;;  %v511_v42 = vadd.f32 %v1373_v37, %v260_v40 }
 0x267   :  { %962 = vmatpush.msra.mxu1 %v893_v46 }
 0x269   :  { %963 = vmatpush.msra.mxu1 %v892_v51  ;;  %v471_v51 = vadd.f32 %v1366_v34, %v258_v44 }
 0x26b   :  { %964 = vmatpush.msra.mxu1 %v891_v55 }
 0x26d   :  { %965 = vmatpush.msra.mxu1 %v890_v60 }
 0x26f   :  { %966 = vmatpush.msra.mxu1 %v889_v0 }
 0x271   :  { %967 = vmatpush.msra.mxu1 %v888_v4 }
 0x273   :  { %968 = vmatpush.msra.mxu1 %v887_v8 }
 0x275   :  { %969 = vmatpush.msra.mxu1 %v886_v12 }
 0x277   :  { %970 = vmatpush.msra.mxu1 %v885_v16 }
 0x279   :  { %971 = vmatpush.msra.mxu1 %v884_v18 }
 0x2db   :  { %v727_v20 = vpop.f32.mrf.mxu1 }
 0x2dc   :  { %v730_v21 = vmul.f32 %v1394_v56, %v727_v20  ;;  %v883_v56 = vld [vmem:[%s1718_s8 + $0x108] sm:$0xff] }
 0x2dd   :  { %972 = vmatpush.msra.mxu1 %v883_v56 }
 0x2de   :  { %1018 = vmatmul.msk.f32.vlgmr.msra.gmra.mxu2 %vm665_vm0, %v730_v21  ;;  %1019 = vmatmul.msk.f32.vlgmr.msra.gmra.mxu3 %vm665_vm0, %v730_v21 }
 0x2df   :  { %1020 = vmatmul.msk.f32.vlgmr.msrb.gmra.mxu1 %vm665_vm0, %v730_v21  ;;  %1021 = vmatmul.msk.f32.vlgmr.msrb.gmra.mxu0 %vm665_vm0, %v730_v21 }
 0x2e0   :  { %973 = vmatpush.msra.mxu1 %v882_v27 }
 0x35c   :  { %v823_v45 = vpop.f32.mrf.mxu1  ;;  %v843_v46 = vpop.f32.mrf.mxu0 }
 0x35d   :  { %v848_v48 = vmul.f32 %v823_v45, %v491_v41  ;;  %v849_v49 = vmul.f32 %v843_v46, %v511_v42 }
 0x35f   :  { %974 = vmatmul.f32.vlgmr.msra.gmra.mxu1 %v848_v48  ;;  %994 = vmatmul.f32.vlgmr.msra.gmra.mxu0 %v849_v49 }
 0x361   :  { %v783_v52 = vpop.f32.mrf.mxu2  ;;  %v803_v53 = vpop.f32.mrf.mxu3 }
 0x362   :  { %v846_v54 = vmul.f32 %v783_v52, %v451_v50  ;;  %v847_v55 = vmul.f32 %v803_v53, %v471_v51 }
 0x364   :  { %934 = vmatmul.f32.vlgmr.msrb.gmra.mxu2 %v846_v54  ;;  %954 = vmatmul.f32.vlgmr.msrb.gmra.mxu3 %v847_v55 }
 0x3dc   :  { %v975_v60 = vpop.f32.mrf.mxu1  ;;  %v995_v34 = vpop.f32.mrf.mxu0 }
 0x3e7   :  { %v935_v37 = vpop.f32.mrf.mxu2  ;;  %v955_v58 = vpop.f32.mrf.mxu3 }
 0x3e8   :  { %v936_v57 = vadd.f32 %v1027_v47, %v935_v37 }
 0x3ea   :  { %v956_v59 = vadd.f32 %v955_v58, %v936_v57 }
 0x3ec   :  { %v976_v33 = vadd.f32 %v975_v60, %v956_v59 }
 0x3ee   :  { %v996_v61 = vadd.f32 %v995_v34, %v976_v33 }
 0x3f0   :  { %998 = vst [vmem:[#allocation5] sm:$0xff] %v996_v61 }
 0x3f1   :  { %1009 = dma.vmem_to_hbm [thread:$0]  %s1005_s6, 128, %s1007_s24, [#allocation4]  }
 0x3f2   :  { %1082 = dma.done.wait [#allocation4], 128  }
 0x3f3   :  { %1083 = vsyncadd [#allocation4], 4294967168 }
 0x3f4   :  { %1014 = vsyncpa [#allocation3], 1 }
 0x3f5   :  { %1015 = vsyncpa [#allocation4], 1 }

</bundles_post_ra>
